<compile_context>
chip_gen: v5e
topology: v5e:2x2
jax: 0.10.0
libtpu: 0.0.40
codegen_flags: <defaults>
</compile_context>

<pallas_src>
import jax
import jax.numpy as jnp
from jax.experimental import pallas as pl
from jax.experimental.pallas import tpu as pltpu

BN_EPS = 1e-5           # nn.BatchNorm1d default
LRELU_SLOPE = 0.01      # nn.LeakyReLU default


# ------------------------- parameter construction -------------------------- #

def _conv_params(key, cout, cin, k):
    k1, k2 = jax.random.split(key)
    bound = 1.0 / (cin * k) ** 0.5
    w = jax.random.uniform(k1, (cout, cin, k), jnp.float32, -bound, bound)
    b = jax.random.uniform(k2, (cout,), jnp.float32, -bound, bound)
    return w, b


def _convT_params(key, cin, cout, k):
    k1, k2 = jax.random.split(key)
    bound = 1.0 / (cin * k) ** 0.5
    w = jax.random.uniform(k1, (cin, cout, k), jnp.float32, -bound, bound)
    b = jax.random.uniform(k2, (cout,), jnp.float32, -bound, bound)
    return w, b


def init_gnet_params(key, indim):
    params = {"enc1": [], "enc2": [], "mid": [], "dec": []}

    def bn(c):
        return jnp.ones((c,), jnp.float32), jnp.zeros((c,), jnp.float32)

    enc_specs = [(indim, 64), (64, 32), (32, 16)]
    for name in ("enc1", "enc2"):
        for cin, cout in enc_specs:
            key, sub = jax.random.split(key)
            w, b = _conv_params(sub, cout, cin, 3)
            g, bt = bn(cout)
            # conv bias kept for parameter fidelity; BN mean-subtraction
            # cancels it exactly, so the kernel never reads it.
            params[name].append(dict(w=w, b=b, gamma=g, beta=bt))

    key, sub = jax.random.split(key)
    w, b = _conv_params(sub, 16, 16, 3)
    g, bt = bn(16)
    params["mid"].append(dict(w=w, b=b, gamma=g, beta=bt))

    dec_specs = [(16, 32), (32, 64), (64, indim)]
    for cin, cout in dec_specs:
        key, sub = jax.random.split(key)
        w, b = _convT_params(sub, cin, cout, 3)
        g, bt = bn(cout)
        params["dec"].append(dict(w=w, b=b, gamma=g, beta=bt))
    return params


# --------------------------------- forward --------------------------------- #

def g_net_forward(params, x, y):
    B, C, L = x.shape
    assert L % 8 == 0, "sequence length must be divisible by 8 (3 stride-2 convs)"
    L8 = L // 8
    BL8 = B * L8
    LANE = max(128, C)

    enc_cout = [int(p["w"].shape[0]) for p in params["enc1"]]     # [64, 32, 16]
    dec_cout = [int(p["w"].shape[1]) for p in params["dec"]]      # [32, 64, C]
    mid_c = int(params["mid"][0]["w"].shape[0])                   # 16

    # ---------------- pack ALL parameters into two buffers ---------------- #
    w_blocks, w_off = [], {}

    def add_w(name, mat):
        mat = mat.astype(jnp.float32)
        r, c = mat.shape
        if c < LANE:
            mat = jnp.pad(mat, ((0, 0), (0, LANE - c)))
        off = sum(int(blk.shape[0]) for blk in w_blocks)
        w_off[name] = (off, r, c)
        w_blocks.append(mat)

    for br, branch in enumerate(("enc1", "enc2")):
        for d, lyr in enumerate(params[branch]):
            w = lyr["w"]                                   # (Cout, Cin, 3)
            cout, cin, _ = w.shape
            # channels-last fused-tap matrix: rows = [W0^T; W1^T; W2^T]
            add_w(f"enc{br}_{d}",
                  jnp.transpose(w, (2, 1, 0)).reshape(3 * cin, cout))

    wm = params["mid"][0]["w"]
    add_w("mid", jnp.transpose(wm, (2, 1, 0)).reshape(3 * mid_c, mid_c))

    for d, lyr in enumerate(params["dec"]):
        w = lyr["w"]                                       # (Cin, Cout, 3)
        add_w(f"dec{d}_w1", w[:, :, 1])                    # even output phases
        add_w(f"dec{d}_w02", jnp.concatenate([w[:, :, 0], w[:, :, 2]], axis=0))

    w_packed = jnp.concatenate(w_blocks, axis=0).astype(jnp.bfloat16)

    p_rows, p_row = [], {}

    def add_p(name, vec):
        vec = vec.astype(jnp.float32)
        row = jnp.zeros((LANE,), jnp.float32).at[: vec.shape[0]].set(vec)
        p_row[name] = len(p_rows)
        p_rows.append(row)

    for br, branch in enumerate(("enc1", "enc2")):
        for d, lyr in enumerate(params[branch]):
            add_p(f"enc{br}_{d}_g", lyr["gamma"])
            add_p(f"enc{br}_{d}_b", lyr["beta"])
    add_p("mid_g", params["mid"][0]["gamma"])
    add_p("mid_b", params["mid"][0]["beta"])
    for d in range(2):
        add_p(f"dec{d}_g", params["dec"][d]["gamma"])
        add_p(f"dec{d}_b", params["dec"][d]["beta"])
    add_p("dec2_bias", params["dec"][2]["b"])
    p_packed = jnp.stack(p_rows)                           # (19, LANE) f32

    # ---- polyphase input packing: (B, C, L) -> (B*L, C), row = (phase, b, j) ---- #
    def to_phase_rows(a):
        a = a.transpose(0, 2, 1).reshape(B, L8, 8, C)       # [b, j, p, c]
        return a.transpose(2, 0, 1, 3).reshape(8 * BL8, C)  # row = p*BL8 + b*L8 + j

    xy = jnp.stack([to_phase_rows(x), to_phase_rows(y)])    # (2, B*L, C) f32

    # ------------------------------- kernel -------------------------------- #
    def kernel(xy_ref, w_ref, p_ref, o_ref):

        def wmat(name):
            off, r, c = w_off[name]
            return w_ref[off:off + r, :c]                   # bf16 (r, c)

        def pvec(name, c):
            r = p_row[name]
            return p_ref[r:r + 1, :c]                       # f32 (1, c)

        def shift_dn(blk):                                   # x[j] -> x[j-1] per batch
            m, c = blk.shape
            sh = jnp.concatenate([jnp.zeros((1, c), blk.dtype), blk[:m - 1]], axis=0)
            rid = jax.lax.broadcasted_iota(jnp.int32, (m, 1), 0)
            return jnp.where(rid % L8 == 0, jnp.zeros_like(sh), sh)

        def shift_up(blk):                                   # x[j] -> x[j+1] per batch
            m, c = blk.shape
            sh = jnp.concatenate([blk[1:], jnp.zeros((1, c), blk.dtype)], axis=0)
            rid = jax.lax.broadcasted_iota(jnp.int32, (m, 1), 0)
            return jnp.where(rid % L8 == L8 - 1, jnp.zeros_like(sh), sh)

        def bn_lrelu(blocks, gname, bname, c):
            # training-mode BatchNorm1d (biased variance) over all positions,
            # stats in f32, gamma folded into the per-channel scale.
            m_tot = sum(b.shape[0] for b in blocks)
            inv = 1.0 / m_tot
            mean = sum(jnp.sum(b, axis=0, keepdims=True) for b in blocks) * inv
            cen = [b - mean for b in blocks]
            var = sum(jnp.sum(cb * cb, axis=0, keepdims=True) for cb in cen) * inv
            scale = pvec(gname, c) * jax.lax.rsqrt(var + BN_EPS)
            beta = pvec(bname, c)
            outs = []
            for cb in cen:
                z = cb * scale + beta
                outs.append(jnp.maximum(z, LRELU_SLOPE * z))   # LeakyReLU(0.01)
            return outs

        def enc_layer(phases, wname, gname, bname, cout):
            # Conv1d(k=3, s=2, p=1) on polyphase streams: output phase q uses
            # input phases (2q-1, 2q, 2q+1); phase -1 = previous position of the
            # last input phase (left zero pad handled by the masked shift).
            pin = len(phases)
            pout = pin // 2

            def tap(r):
                return shift_dn(phases[pin - 1]) if r < 0 else phases[r]

            ops = [jnp.concatenate([tap(2 * q - 1), tap(2 * q), tap(2 * q + 1)],
                                   axis=-1) for q in range(pout)]
            operand = ops[0] if pout == 1 else jnp.concatenate(ops, axis=0)
            ymat = jnp.dot(operand.astype(jnp.bfloat16), wmat(wname),
                           preferred_element_type=jnp.float32)
            z = bn_lrelu([ymat], gname, bname, cout)[0]
            return [z[q * BL8:(q + 1) * BL8] for q in range(pout)]

        def dec_layer(phases, d, cout, last):
            # ConvTranspose1d(k=3, s=2, p=1, out_pad=1):
            #   even output phase 2r   = X[r]   @ W1
            #   odd  output phase 2r+1 = X[r+1] @ W0 + X[r] @ W2  (X[pin] = shift_up(X[0]))
            pin = len(phases)
            x_even = phases[0] if pin == 1 else jnp.concatenate(phases, axis=0)
            y_even = jnp.dot(x_even.astype(jnp.bfloat16), wmat(f"dec{d}_w1"),
                             preferred_element_type=jnp.float32)
            odd_ops = []
            for r in range(pin):
                nxt = shift_up(phases[0]) if r + 1 == pin else phases[r + 1]
                odd_ops.append(jnp.concatenate([nxt, phases[r]], axis=-1))
            x_odd = odd_ops[0] if pin == 1 else jnp.concatenate(odd_ops, axis=0)
            y_odd = jnp.dot(x_odd.astype(jnp.bfloat16), wmat(f"dec{d}_w02"),
                            preferred_element_type=jnp.float32)
            if last:
                bias = pvec("dec2_bias", cout)
                y_even = y_even + bias
                y_odd = y_odd + bias
            else:
                y_even, y_odd = bn_lrelu([y_even, y_odd],
                                         f"dec{d}_g", f"dec{d}_b", cout)
            out = []
            for r in range(pin):
                out.append(y_even[r * BL8:(r + 1) * BL8])
                out.append(y_odd[r * BL8:(r + 1) * BL8])
            return out

        # ---- two encoder branches, averaged ----
        branch_out = []
        for br in range(2):
            xfull = xy_ref[br]                               # (B*L, C) f32
            phases = [xfull[p * BL8:(p + 1) * BL8, :] for p in range(8)]
            for d in range(3):
                phases = enc_layer(phases, f"enc{br}_{d}",
                                   f"enc{br}_{d}_g", f"enc{br}_{d}_b", enc_cout[d])
            branch_out.append(phases[0])
        z = (branch_out[0] + branch_out[1]) * 0.5            # (B*L8, 16) f32

        # ---- mid hidden: Conv1d(k=3, s=1, p=1) ----
        op = jnp.concatenate([shift_dn(z), z, shift_up(z)], axis=-1)
        ymid = jnp.dot(op.astype(jnp.bfloat16), wmat("mid"),
                       preferred_element_type=jnp.float32)
        z = bn_lrelu([ymid], "mid_g", "mid_b", mid_c)[0]

        # ---- decoder (3 ConvTranspose layers) ----
        blocks = [z]
        for d in range(3):
            blocks = dec_layer(blocks, d, dec_cout[d], last=(d == 2))

        # 8 phase blocks (BL8, C) in phase order -> lane-dense (B*L, C) store
        o_ref[...] = jnp.concatenate(blocks, axis=0)

    out2d = pl.pallas_call(
        kernel,
        out_shape=jax.ShapeDtypeStruct((B * L, C), jnp.float32),
        in_specs=[pl.BlockSpec(memory_space=pltpu.MemorySpace.VMEM)
                  for _ in range(3)],
        out_specs=pl.BlockSpec(memory_space=pltpu.MemorySpace.VMEM),
        compiler_params=pltpu.CompilerParams(
            vmem_limit_bytes=32 * 1024 * 1024),   # whole net uses well under 1 MiB
    )(xy, w_packed, p_packed)

    # rows (p, b, j) -> (B, C, L) with l = 8*j + p
    return out2d.reshape(8, B, L8, C).transpose(1, 3, 2, 0).reshape(B, C, L)


# ----------------------------------- main ----------------------------------- #

if __name__ == "__main__":
    INDIM, B, L = 128, 2, 16     # module default indim; small B, L (L % 8 == 0)
    key = jax.random.PRNGKey(0)
    kp, kx, ky = jax.random.split(key, 3)

    params = init_gnet_params(kp, INDIM)
    x = jax.random.normal(kx, (B, INDIM, L), jnp.float32)
    y = jax.random.normal(ky, (B, INDIM, L), jnp.float32)

    out = jax.jit(g_net_forward)(params, x, y)
    out = jax.block_until_ready(out)
    assert out.shape == (B, INDIM, L), out.shape
    assert bool(jnp.all(jnp.isfinite(out)))
    print("KERNEL_OK")
</pallas_src>

<mosaic_0001>
module attributes {stable_mosaic.version = 11 : i64} {
  func.func @kernel(%arg0: memref<2x32x128xf32, #tpu.memory_space<vmem>>, %arg1: memref<1728x128xbf16, #tpu.memory_space<vmem>>, %arg2: memref<19x128xf32, #tpu.memory_space<vmem>>, %arg3: memref<32x128xf32, #tpu.memory_space<vmem>>) attributes {dimension_semantics = [], scalar_prefetch = 0 : i64, scratch_operands = 0 : i64, tpu.core_type = #tpu.core_type<tc>} {
    %c0 = arith.constant 0 : index
    %c0_0 = arith.constant 0 : index
    %c0_1 = arith.constant 0 : index
    %0 = vector.load %arg0[%c0, %c0_0, %c0_1] : memref<2x32x128xf32, #tpu.memory_space<vmem>>, vector<1x32x128xf32>
    %1 = vector.shape_cast %0 : vector<1x32x128xf32> to vector<32x128xf32>
    %2 = vector.extract_strided_slice %1 {offsets = [0, 0], sizes = [4, 128], strides = [1, 1]} : vector<32x128xf32> to vector<4x128xf32>
    %3 = vector.extract_strided_slice %1 {offsets = [4, 0], sizes = [4, 128], strides = [1, 1]} : vector<32x128xf32> to vector<4x128xf32>
    %4 = vector.extract_strided_slice %1 {offsets = [8, 0], sizes = [4, 128], strides = [1, 1]} : vector<32x128xf32> to vector<4x128xf32>
    %5 = vector.extract_strided_slice %1 {offsets = [12, 0], sizes = [4, 128], strides = [1, 1]} : vector<32x128xf32> to vector<4x128xf32>
    %6 = vector.extract_strided_slice %1 {offsets = [16, 0], sizes = [4, 128], strides = [1, 1]} : vector<32x128xf32> to vector<4x128xf32>
    %7 = vector.extract_strided_slice %1 {offsets = [20, 0], sizes = [4, 128], strides = [1, 1]} : vector<32x128xf32> to vector<4x128xf32>
    %8 = vector.extract_strided_slice %1 {offsets = [24, 0], sizes = [4, 128], strides = [1, 1]} : vector<32x128xf32> to vector<4x128xf32>
    %9 = vector.extract_strided_slice %1 {offsets = [28, 0], sizes = [4, 128], strides = [1, 1]} : vector<32x128xf32> to vector<4x128xf32>
    %cst = arith.constant 0.000000e+00 : f32
    %10 = vector.broadcast %cst : f32 to vector<1x128xf32>
    %11 = vector.extract_strided_slice %9 {offsets = [0, 0], sizes = [3, 128], strides = [1, 1]} : vector<4x128xf32> to vector<3x128xf32>
    %12 = tpu.concatenate %10, %11 in 0 : vector<1x128xf32>, vector<3x128xf32> -> vector<4x128xf32>
    %13 = tpu.iota {dimensions = array<i32: 0>} : vector<4x1xi32>
    %c2_i32 = arith.constant 2 : i32
    %c0_i32 = arith.constant 0 : i32
    %14 = arith.cmpi eq, %c2_i32, %c0_i32 : i32
    %c1_i32 = arith.constant 1 : i32
    %15 = arith.select %14, %c1_i32, %c2_i32 : i32
    %16 = vector.broadcast %15 : i32 to vector<4x1xi32>
    %17 = arith.remsi %13, %16 : vector<4x1xi32>
    %c0_i32_2 = arith.constant 0 : i32
    %18 = vector.broadcast %c0_i32_2 : i32 to vector<4x1xi32>
    %19 = arith.cmpi ne, %17, %18 : vector<4x1xi32>
    %c0_i32_3 = arith.constant 0 : i32
    %20 = vector.broadcast %c0_i32_3 : i32 to vector<4x1xi32>
    %21 = arith.cmpi slt, %17, %20 : vector<4x1xi32>
    %c0_i32_4 = arith.constant 0 : i32
    %22 = arith.cmpi slt, %15, %c0_i32_4 : i32
    %23 = vector.broadcast %22 : i1 to vector<4x1xi1>
    %24 = vector.broadcast %23 : vector<4x1xi1> to vector<4x1xi1>
    %25 = arith.xori %21, %24 : vector<4x1xi1>
    %26 = arith.andi %25, %19 : vector<4x1xi1>
    %27 = vector.broadcast %15 : i32 to vector<4x1xi32>
    %28 = arith.addi %17, %27 : vector<4x1xi32>
    %29 = arith.select %26, %28, %17 : vector<4x1xi1>, vector<4x1xi32>
    %c0_i32_5 = arith.constant 0 : i32
    %30 = vector.broadcast %c0_i32_5 : i32 to vector<4x1xi32>
    %31 = arith.cmpi eq, %29, %30 : vector<4x1xi32>
    %cst_6 = arith.constant 0.000000e+00 : f32
    %32 = vector.broadcast %cst_6 : f32 to vector<4x128xf32>
    %33 = vector.shape_cast %31 : vector<4x1xi1> to vector<4x1xi1>
    %34 = vector.broadcast %33 : vector<4x1xi1> to vector<4x128xi1>
    %35 = arith.select %34, %32, %12 : vector<4x128xi1>, vector<4x128xf32>
    %36 = tpu.concatenate %35, %2, %3 in 1 : vector<4x128xf32>, vector<4x128xf32>, vector<4x128xf32> -> vector<4x384xf32>
    %37 = tpu.concatenate %3, %4, %5 in 1 : vector<4x128xf32>, vector<4x128xf32>, vector<4x128xf32> -> vector<4x384xf32>
    %38 = tpu.concatenate %5, %6, %7 in 1 : vector<4x128xf32>, vector<4x128xf32>, vector<4x128xf32> -> vector<4x384xf32>
    %39 = tpu.concatenate %7, %8, %9 in 1 : vector<4x128xf32>, vector<4x128xf32>, vector<4x128xf32> -> vector<4x384xf32>
    %40 = tpu.concatenate %36, %37, %38, %39 in 0 : vector<4x384xf32>, vector<4x384xf32>, vector<4x384xf32>, vector<4x384xf32> -> vector<16x384xf32>
    %41 = arith.truncf %40 : vector<16x384xf32> to vector<16x384xbf16>
    %c0_7 = arith.constant 0 : index
    %c0_8 = arith.constant 0 : index
    %42 = vector.load %arg1[%c0_7, %c0_8] : memref<1728x128xbf16, #tpu.memory_space<vmem>>, vector<384x64xbf16>
    %cst_9 = arith.constant dense<0.000000e+00> : vector<16x64xf32>
    %43 = tpu.matmul %41, %42, %cst_9 {dimension_numbers = #tpu.dot_dimension_numbers<[1], [0], [0], [1], [0, 0, 1, 1], [], []>} : vector<16x384xbf16>, vector<384x64xbf16>, vector<16x64xf32> -> vector<16x64xf32>
    %cst_10 = arith.constant dense<0.000000e+00> : vector<64xf32>
    %44 = vector.multi_reduction <add>, %43, %cst_10 [0] : vector<16x64xf32> to vector<64xf32>
    %45 = vector.shape_cast %44 : vector<64xf32> to vector<1x64xf32>
    %cst_11 = arith.constant 0.000000e+00 : f32
    %46 = vector.broadcast %cst_11 : f32 to vector<1x64xf32>
    %47 = arith.addf %46, %45 : vector<1x64xf32>
    %cst_12 = arith.constant 6.250000e-02 : f32
    %48 = vector.broadcast %cst_12 : f32 to vector<1x64xf32>
    %49 = arith.mulf %47, %48 : vector<1x64xf32>
    %50 = vector.broadcast %49 : vector<1x64xf32> to vector<16x64xf32>
    %51 = arith.subf %43, %50 : vector<16x64xf32>
    %52 = arith.mulf %51, %51 : vector<16x64xf32>
    %cst_13 = arith.constant dense<0.000000e+00> : vector<64xf32>
    %53 = vector.multi_reduction <add>, %52, %cst_13 [0] : vector<16x64xf32> to vector<64xf32>
    %54 = vector.shape_cast %53 : vector<64xf32> to vector<1x64xf32>
    %cst_14 = arith.constant 0.000000e+00 : f32
    %55 = vector.broadcast %cst_14 : f32 to vector<1x64xf32>
    %56 = arith.addf %55, %54 : vector<1x64xf32>
    %cst_15 = arith.constant 6.250000e-02 : f32
    %57 = vector.broadcast %cst_15 : f32 to vector<1x64xf32>
    %58 = arith.mulf %56, %57 : vector<1x64xf32>
    %c0_16 = arith.constant 0 : index
    %c0_17 = arith.constant 0 : index
    %59 = vector.load %arg2[%c0_16, %c0_17] : memref<19x128xf32, #tpu.memory_space<vmem>>, vector<1x64xf32>
    %cst_18 = arith.constant 9.99999974E-6 : f32
    %60 = vector.broadcast %cst_18 : f32 to vector<1x64xf32>
    %61 = arith.addf %58, %60 : vector<1x64xf32>
    %62 = math.rsqrt %61 : vector<1x64xf32>
    %63 = arith.mulf %59, %62 : vector<1x64xf32>
    %c1 = arith.constant 1 : index
    %c0_19 = arith.constant 0 : index
    %64 = vector.load %arg2[%c1, %c0_19] : memref<19x128xf32, #tpu.memory_space<vmem>>, vector<1x64xf32>
    %65 = vector.broadcast %63 : vector<1x64xf32> to vector<16x64xf32>
    %66 = arith.mulf %51, %65 : vector<16x64xf32>
    %67 = vector.broadcast %64 : vector<1x64xf32> to vector<16x64xf32>
    %68 = arith.addf %66, %67 : vector<16x64xf32>
    %cst_20 = arith.constant 0.00999999977 : f32
    %69 = vector.broadcast %cst_20 : f32 to vector<16x64xf32>
    %70 = arith.mulf %69, %68 : vector<16x64xf32>
    %71 = arith.maximumf %68, %70 : vector<16x64xf32>
    %72 = vector.extract_strided_slice %71 {offsets = [0, 0], sizes = [4, 64], strides = [1, 1]} : vector<16x64xf32> to vector<4x64xf32>
    %73 = vector.extract_strided_slice %71 {offsets = [4, 0], sizes = [4, 64], strides = [1, 1]} : vector<16x64xf32> to vector<4x64xf32>
    %74 = vector.extract_strided_slice %71 {offsets = [8, 0], sizes = [4, 64], strides = [1, 1]} : vector<16x64xf32> to vector<4x64xf32>
    %75 = vector.extract_strided_slice %71 {offsets = [12, 0], sizes = [4, 64], strides = [1, 1]} : vector<16x64xf32> to vector<4x64xf32>
    %cst_21 = arith.constant 0.000000e+00 : f32
    %76 = vector.broadcast %cst_21 : f32 to vector<1x64xf32>
    %77 = vector.extract_strided_slice %75 {offsets = [0, 0], sizes = [3, 64], strides = [1, 1]} : vector<4x64xf32> to vector<3x64xf32>
    %78 = tpu.concatenate %76, %77 in 0 : vector<1x64xf32>, vector<3x64xf32> -> vector<4x64xf32>
    %79 = tpu.iota {dimensions = array<i32: 0>} : vector<4x1xi32>
    %c2_i32_22 = arith.constant 2 : i32
    %c0_i32_23 = arith.constant 0 : i32
    %80 = arith.cmpi eq, %c2_i32_22, %c0_i32_23 : i32
    %c1_i32_24 = arith.constant 1 : i32
    %81 = arith.select %80, %c1_i32_24, %c2_i32_22 : i32
    %82 = vector.broadcast %81 : i32 to vector<4x1xi32>
    %83 = arith.remsi %79, %82 : vector<4x1xi32>
    %c0_i32_25 = arith.constant 0 : i32
    %84 = vector.broadcast %c0_i32_25 : i32 to vector<4x1xi32>
    %85 = arith.cmpi ne, %83, %84 : vector<4x1xi32>
    %c0_i32_26 = arith.constant 0 : i32
    %86 = vector.broadcast %c0_i32_26 : i32 to vector<4x1xi32>
    %87 = arith.cmpi slt, %83, %86 : vector<4x1xi32>
    %c0_i32_27 = arith.constant 0 : i32
    %88 = arith.cmpi slt, %81, %c0_i32_27 : i32
    %89 = vector.broadcast %88 : i1 to vector<4x1xi1>
    %90 = vector.broadcast %89 : vector<4x1xi1> to vector<4x1xi1>
    %91 = arith.xori %87, %90 : vector<4x1xi1>
    %92 = arith.andi %91, %85 : vector<4x1xi1>
    %93 = vector.broadcast %81 : i32 to vector<4x1xi32>
    %94 = arith.addi %83, %93 : vector<4x1xi32>
    %95 = arith.select %92, %94, %83 : vector<4x1xi1>, vector<4x1xi32>
    %c0_i32_28 = arith.constant 0 : i32
    %96 = vector.broadcast %c0_i32_28 : i32 to vector<4x1xi32>
    %97 = arith.cmpi eq, %95, %96 : vector<4x1xi32>
    %cst_29 = arith.constant 0.000000e+00 : f32
    %98 = vector.broadcast %cst_29 : f32 to vector<4x64xf32>
    %99 = vector.shape_cast %97 : vector<4x1xi1> to vector<4x1xi1>
    %100 = vector.broadcast %99 : vector<4x1xi1> to vector<4x64xi1>
    %101 = arith.select %100, %98, %78 : vector<4x64xi1>, vector<4x64xf32>
    %102 = tpu.concatenate %101, %72, %73 in 1 : vector<4x64xf32>, vector<4x64xf32>, vector<4x64xf32> -> vector<4x192xf32>
    %103 = tpu.concatenate %73, %74, %75 in 1 : vector<4x64xf32>, vector<4x64xf32>, vector<4x64xf32> -> vector<4x192xf32>
    %104 = tpu.concatenate %102, %103 in 0 : vector<4x192xf32>, vector<4x192xf32> -> vector<8x192xf32>
    %105 = arith.truncf %104 : vector<8x192xf32> to vector<8x192xbf16>
    %c384 = arith.constant 384 : index
    %c0_30 = arith.constant 0 : index
    %106 = vector.load %arg1[%c384, %c0_30] : memref<1728x128xbf16, #tpu.memory_space<vmem>>, vector<192x32xbf16>
    %cst_31 = arith.constant dense<0.000000e+00> : vector<8x32xf32>
    %107 = tpu.matmul %105, %106, %cst_31 {dimension_numbers = #tpu.dot_dimension_numbers<[1], [0], [0], [1], [0, 0, 1, 1], [], []>} : vector<8x192xbf16>, vector<192x32xbf16>, vector<8x32xf32> -> vector<8x32xf32>
    %cst_32 = arith.constant dense<0.000000e+00> : vector<32xf32>
    %108 = vector.multi_reduction <add>, %107, %cst_32 [0] : vector<8x32xf32> to vector<32xf32>
    %109 = vector.shape_cast %108 : vector<32xf32> to vector<1x32xf32>
    %cst_33 = arith.constant 0.000000e+00 : f32
    %110 = vector.broadcast %cst_33 : f32 to vector<1x32xf32>
    %111 = arith.addf %110, %109 : vector<1x32xf32>
    %cst_34 = arith.constant 1.250000e-01 : f32
    %112 = vector.broadcast %cst_34 : f32 to vector<1x32xf32>
    %113 = arith.mulf %111, %112 : vector<1x32xf32>
    %114 = vector.broadcast %113 : vector<1x32xf32> to vector<8x32xf32>
    %115 = arith.subf %107, %114 : vector<8x32xf32>
    %116 = arith.mulf %115, %115 : vector<8x32xf32>
    %cst_35 = arith.constant dense<0.000000e+00> : vector<32xf32>
    %117 = vector.multi_reduction <add>, %116, %cst_35 [0] : vector<8x32xf32> to vector<32xf32>
    %118 = vector.shape_cast %117 : vector<32xf32> to vector<1x32xf32>
    %cst_36 = arith.constant 0.000000e+00 : f32
    %119 = vector.broadcast %cst_36 : f32 to vector<1x32xf32>
    %120 = arith.addf %119, %118 : vector<1x32xf32>
    %cst_37 = arith.constant 1.250000e-01 : f32
    %121 = vector.broadcast %cst_37 : f32 to vector<1x32xf32>
    %122 = arith.mulf %120, %121 : vector<1x32xf32>
    %c2 = arith.constant 2 : index
    %c0_38 = arith.constant 0 : index
    %123 = vector.load %arg2[%c2, %c0_38] : memref<19x128xf32, #tpu.memory_space<vmem>>, vector<1x32xf32>
    %cst_39 = arith.constant 9.99999974E-6 : f32
    %124 = vector.broadcast %cst_39 : f32 to vector<1x32xf32>
    %125 = arith.addf %122, %124 : vector<1x32xf32>
    %126 = math.rsqrt %125 : vector<1x32xf32>
    %127 = arith.mulf %123, %126 : vector<1x32xf32>
    %c3 = arith.constant 3 : index
    %c0_40 = arith.constant 0 : index
    %128 = vector.load %arg2[%c3, %c0_40] : memref<19x128xf32, #tpu.memory_space<vmem>>, vector<1x32xf32>
    %129 = vector.broadcast %127 : vector<1x32xf32> to vector<8x32xf32>
    %130 = arith.mulf %115, %129 : vector<8x32xf32>
    %131 = vector.broadcast %128 : vector<1x32xf32> to vector<8x32xf32>
    %132 = arith.addf %130, %131 : vector<8x32xf32>
    %cst_41 = arith.constant 0.00999999977 : f32
    %133 = vector.broadcast %cst_41 : f32 to vector<8x32xf32>
    %134 = arith.mulf %133, %132 : vector<8x32xf32>
    %135 = arith.maximumf %132, %134 : vector<8x32xf32>
    %136 = vector.extract_strided_slice %135 {offsets = [0, 0], sizes = [4, 32], strides = [1, 1]} : vector<8x32xf32> to vector<4x32xf32>
    %137 = vector.extract_strided_slice %135 {offsets = [4, 0], sizes = [4, 32], strides = [1, 1]} : vector<8x32xf32> to vector<4x32xf32>
    %cst_42 = arith.constant 0.000000e+00 : f32
    %138 = vector.broadcast %cst_42 : f32 to vector<1x32xf32>
    %139 = vector.extract_strided_slice %137 {offsets = [0, 0], sizes = [3, 32], strides = [1, 1]} : vector<4x32xf32> to vector<3x32xf32>
    %140 = tpu.concatenate %138, %139 in 0 : vector<1x32xf32>, vector<3x32xf32> -> vector<4x32xf32>
    %141 = tpu.iota {dimensions = array<i32: 0>} : vector<4x1xi32>
    %c2_i32_43 = arith.constant 2 : i32
    %c0_i32_44 = arith.constant 0 : i32
    %142 = arith.cmpi eq, %c2_i32_43, %c0_i32_44 : i32
    %c1_i32_45 = arith.constant 1 : i32
    %143 = arith.select %142, %c1_i32_45, %c2_i32_43 : i32
    %144 = vector.broadcast %143 : i32 to vector<4x1xi32>
    %145 = arith.remsi %141, %144 : vector<4x1xi32>
    %c0_i32_46 = arith.constant 0 : i32
    %146 = vector.broadcast %c0_i32_46 : i32 to vector<4x1xi32>
    %147 = arith.cmpi ne, %145, %146 : vector<4x1xi32>
    %c0_i32_47 = arith.constant 0 : i32
    %148 = vector.broadcast %c0_i32_47 : i32 to vector<4x1xi32>
    %149 = arith.cmpi slt, %145, %148 : vector<4x1xi32>
    %c0_i32_48 = arith.constant 0 : i32
    %150 = arith.cmpi slt, %143, %c0_i32_48 : i32
    %151 = vector.broadcast %150 : i1 to vector<4x1xi1>
    %152 = vector.broadcast %151 : vector<4x1xi1> to vector<4x1xi1>
    %153 = arith.xori %149, %152 : vector<4x1xi1>
    %154 = arith.andi %153, %147 : vector<4x1xi1>
    %155 = vector.broadcast %143 : i32 to vector<4x1xi32>
    %156 = arith.addi %145, %155 : vector<4x1xi32>
    %157 = arith.select %154, %156, %145 : vector<4x1xi1>, vector<4x1xi32>
    %c0_i32_49 = arith.constant 0 : i32
    %158 = vector.broadcast %c0_i32_49 : i32 to vector<4x1xi32>
    %159 = arith.cmpi eq, %157, %158 : vector<4x1xi32>
    %cst_50 = arith.constant 0.000000e+00 : f32
    %160 = vector.broadcast %cst_50 : f32 to vector<4x32xf32>
    %161 = vector.shape_cast %159 : vector<4x1xi1> to vector<4x1xi1>
    %162 = vector.broadcast %161 : vector<4x1xi1> to vector<4x32xi1>
    %163 = arith.select %162, %160, %140 : vector<4x32xi1>, vector<4x32xf32>
    %164 = tpu.concatenate %163, %136, %137 in 1 : vector<4x32xf32>, vector<4x32xf32>, vector<4x32xf32> -> vector<4x96xf32>
    %165 = arith.truncf %164 : vector<4x96xf32> to vector<4x96xbf16>
    %c576 = arith.constant 576 : index
    %c0_51 = arith.constant 0 : index
    %166 = vector.load %arg1[%c576, %c0_51] : memref<1728x128xbf16, #tpu.memory_space<vmem>>, vector<96x16xbf16>
    %cst_52 = arith.constant dense<0.000000e+00> : vector<4x16xf32>
    %167 = tpu.matmul %165, %166, %cst_52 {dimension_numbers = #tpu.dot_dimension_numbers<[1], [0], [0], [1], [0, 0, 1, 1], [], []>} : vector<4x96xbf16>, vector<96x16xbf16>, vector<4x16xf32> -> vector<4x16xf32>
    %cst_53 = arith.constant dense<0.000000e+00> : vector<16xf32>
    %168 = vector.multi_reduction <add>, %167, %cst_53 [0] : vector<4x16xf32> to vector<16xf32>
    %169 = vector.shape_cast %168 : vector<16xf32> to vector<1x16xf32>
    %cst_54 = arith.constant 0.000000e+00 : f32
    %170 = vector.broadcast %cst_54 : f32 to vector<1x16xf32>
    %171 = arith.addf %170, %169 : vector<1x16xf32>
    %cst_55 = arith.constant 2.500000e-01 : f32
    %172 = vector.broadcast %cst_55 : f32 to vector<1x16xf32>
    %173 = arith.mulf %171, %172 : vector<1x16xf32>
    %174 = vector.broadcast %173 : vector<1x16xf32> to vector<4x16xf32>
    %175 = arith.subf %167, %174 : vector<4x16xf32>
    %176 = arith.mulf %175, %175 : vector<4x16xf32>
    %cst_56 = arith.constant dense<0.000000e+00> : vector<16xf32>
    %177 = vector.multi_reduction <add>, %176, %cst_56 [0] : vector<4x16xf32> to vector<16xf32>
    %178 = vector.shape_cast %177 : vector<16xf32> to vector<1x16xf32>
    %cst_57 = arith.constant 0.000000e+00 : f32
    %179 = vector.broadcast %cst_57 : f32 to vector<1x16xf32>
    %180 = arith.addf %179, %178 : vector<1x16xf32>
    %cst_58 = arith.constant 2.500000e-01 : f32
    %181 = vector.broadcast %cst_58 : f32 to vector<1x16xf32>
    %182 = arith.mulf %180, %181 : vector<1x16xf32>
    %c4 = arith.constant 4 : index
    %c0_59 = arith.constant 0 : index
    %183 = vector.load %arg2[%c4, %c0_59] : memref<19x128xf32, #tpu.memory_space<vmem>>, vector<1x16xf32>
    %cst_60 = arith.constant 9.99999974E-6 : f32
    %184 = vector.broadcast %cst_60 : f32 to vector<1x16xf32>
    %185 = arith.addf %182, %184 : vector<1x16xf32>
    %186 = math.rsqrt %185 : vector<1x16xf32>
    %187 = arith.mulf %183, %186 : vector<1x16xf32>
    %c5 = arith.constant 5 : index
    %c0_61 = arith.constant 0 : index
    %188 = vector.load %arg2[%c5, %c0_61] : memref<19x128xf32, #tpu.memory_space<vmem>>, vector<1x16xf32>
    %189 = vector.broadcast %187 : vector<1x16xf32> to vector<4x16xf32>
    %190 = arith.mulf %175, %189 : vector<4x16xf32>
    %191 = vector.broadcast %188 : vector<1x16xf32> to vector<4x16xf32>
    %192 = arith.addf %190, %191 : vector<4x16xf32>
    %cst_62 = arith.constant 0.00999999977 : f32
    %193 = vector.broadcast %cst_62 : f32 to vector<4x16xf32>
    %194 = arith.mulf %193, %192 : vector<4x16xf32>
    %195 = arith.maximumf %192, %194 : vector<4x16xf32>
    %c1_63 = arith.constant 1 : index
    %c0_64 = arith.constant 0 : index
    %c0_65 = arith.constant 0 : index
    %196 = vector.load %arg0[%c1_63, %c0_64, %c0_65] : memref<2x32x128xf32, #tpu.memory_space<vmem>>, vector<1x32x128xf32>
    %197 = vector.shape_cast %196 : vector<1x32x128xf32> to vector<32x128xf32>
    %198 = vector.extract_strided_slice %197 {offsets = [0, 0], sizes = [4, 128], strides = [1, 1]} : vector<32x128xf32> to vector<4x128xf32>
    %199 = vector.extract_strided_slice %197 {offsets = [4, 0], sizes = [4, 128], strides = [1, 1]} : vector<32x128xf32> to vector<4x128xf32>
    %200 = vector.extract_strided_slice %197 {offsets = [8, 0], sizes = [4, 128], strides = [1, 1]} : vector<32x128xf32> to vector<4x128xf32>
    %201 = vector.extract_strided_slice %197 {offsets = [12, 0], sizes = [4, 128], strides = [1, 1]} : vector<32x128xf32> to vector<4x128xf32>
    %202 = vector.extract_strided_slice %197 {offsets = [16, 0], sizes = [4, 128], strides = [1, 1]} : vector<32x128xf32> to vector<4x128xf32>
    %203 = vector.extract_strided_slice %197 {offsets = [20, 0], sizes = [4, 128], strides = [1, 1]} : vector<32x128xf32> to vector<4x128xf32>
    %204 = vector.extract_strided_slice %197 {offsets = [24, 0], sizes = [4, 128], strides = [1, 1]} : vector<32x128xf32> to vector<4x128xf32>
    %205 = vector.extract_strided_slice %197 {offsets = [28, 0], sizes = [4, 128], strides = [1, 1]} : vector<32x128xf32> to vector<4x128xf32>
    %cst_66 = arith.constant 0.000000e+00 : f32
    %206 = vector.broadcast %cst_66 : f32 to vector<1x128xf32>
    %207 = vector.extract_strided_slice %205 {offsets = [0, 0], sizes = [3, 128], strides = [1, 1]} : vector<4x128xf32> to vector<3x128xf32>
    %208 = tpu.concatenate %206, %207 in 0 : vector<1x128xf32>, vector<3x128xf32> -> vector<4x128xf32>
    %209 = tpu.iota {dimensions = array<i32: 0>} : vector<4x1xi32>
    %c2_i32_67 = arith.constant 2 : i32
    %c0_i32_68 = arith.constant 0 : i32
    %210 = arith.cmpi eq, %c2_i32_67, %c0_i32_68 : i32
    %c1_i32_69 = arith.constant 1 : i32
    %211 = arith.select %210, %c1_i32_69, %c2_i32_67 : i32
    %212 = vector.broadcast %211 : i32 to vector<4x1xi32>
    %213 = arith.remsi %209, %212 : vector<4x1xi32>
    %c0_i32_70 = arith.constant 0 : i32
    %214 = vector.broadcast %c0_i32_70 : i32 to vector<4x1xi32>
    %215 = arith.cmpi ne, %213, %214 : vector<4x1xi32>
    %c0_i32_71 = arith.constant 0 : i32
    %216 = vector.broadcast %c0_i32_71 : i32 to vector<4x1xi32>
    %217 = arith.cmpi slt, %213, %216 : vector<4x1xi32>
    %c0_i32_72 = arith.constant 0 : i32
    %218 = arith.cmpi slt, %211, %c0_i32_72 : i32
    %219 = vector.broadcast %218 : i1 to vector<4x1xi1>
    %220 = vector.broadcast %219 : vector<4x1xi1> to vector<4x1xi1>
    %221 = arith.xori %217, %220 : vector<4x1xi1>
    %222 = arith.andi %221, %215 : vector<4x1xi1>
    %223 = vector.broadcast %211 : i32 to vector<4x1xi32>
    %224 = arith.addi %213, %223 : vector<4x1xi32>
    %225 = arith.select %222, %224, %213 : vector<4x1xi1>, vector<4x1xi32>
    %c0_i32_73 = arith.constant 0 : i32
    %226 = vector.broadcast %c0_i32_73 : i32 to vector<4x1xi32>
    %227 = arith.cmpi eq, %225, %226 : vector<4x1xi32>
    %cst_74 = arith.constant 0.000000e+00 : f32
    %228 = vector.broadcast %cst_74 : f32 to vector<4x128xf32>
    %229 = vector.shape_cast %227 : vector<4x1xi1> to vector<4x1xi1>
    %230 = vector.broadcast %229 : vector<4x1xi1> to vector<4x128xi1>
    %231 = arith.select %230, %228, %208 : vector<4x128xi1>, vector<4x128xf32>
    %232 = tpu.concatenate %231, %198, %199 in 1 : vector<4x128xf32>, vector<4x128xf32>, vector<4x128xf32> -> vector<4x384xf32>
    %233 = tpu.concatenate %199, %200, %201 in 1 : vector<4x128xf32>, vector<4x128xf32>, vector<4x128xf32> -> vector<4x384xf32>
    %234 = tpu.concatenate %201, %202, %203 in 1 : vector<4x128xf32>, vector<4x128xf32>, vector<4x128xf32> -> vector<4x384xf32>
    %235 = tpu.concatenate %203, %204, %205 in 1 : vector<4x128xf32>, vector<4x128xf32>, vector<4x128xf32> -> vector<4x384xf32>
    %236 = tpu.concatenate %232, %233, %234, %235 in 0 : vector<4x384xf32>, vector<4x384xf32>, vector<4x384xf32>, vector<4x384xf32> -> vector<16x384xf32>
    %237 = arith.truncf %236 : vector<16x384xf32> to vector<16x384xbf16>
    %c672 = arith.constant 672 : index
    %c0_75 = arith.constant 0 : index
    %238 = vector.load %arg1[%c672, %c0_75] : memref<1728x128xbf16, #tpu.memory_space<vmem>>, vector<384x64xbf16>
    %cst_76 = arith.constant dense<0.000000e+00> : vector<16x64xf32>
    %239 = tpu.matmul %237, %238, %cst_76 {dimension_numbers = #tpu.dot_dimension_numbers<[1], [0], [0], [1], [0, 0, 1, 1], [], []>} : vector<16x384xbf16>, vector<384x64xbf16>, vector<16x64xf32> -> vector<16x64xf32>
    %cst_77 = arith.constant dense<0.000000e+00> : vector<64xf32>
    %240 = vector.multi_reduction <add>, %239, %cst_77 [0] : vector<16x64xf32> to vector<64xf32>
    %241 = vector.shape_cast %240 : vector<64xf32> to vector<1x64xf32>
    %cst_78 = arith.constant 0.000000e+00 : f32
    %242 = vector.broadcast %cst_78 : f32 to vector<1x64xf32>
    %243 = arith.addf %242, %241 : vector<1x64xf32>
    %cst_79 = arith.constant 6.250000e-02 : f32
    %244 = vector.broadcast %cst_79 : f32 to vector<1x64xf32>
    %245 = arith.mulf %243, %244 : vector<1x64xf32>
    %246 = vector.broadcast %245 : vector<1x64xf32> to vector<16x64xf32>
    %247 = arith.subf %239, %246 : vector<16x64xf32>
    %248 = arith.mulf %247, %247 : vector<16x64xf32>
    %cst_80 = arith.constant dense<0.000000e+00> : vector<64xf32>
    %249 = vector.multi_reduction <add>, %248, %cst_80 [0] : vector<16x64xf32> to vector<64xf32>
    %250 = vector.shape_cast %249 : vector<64xf32> to vector<1x64xf32>
    %cst_81 = arith.constant 0.000000e+00 : f32
    %251 = vector.broadcast %cst_81 : f32 to vector<1x64xf32>
    %252 = arith.addf %251, %250 : vector<1x64xf32>
    %cst_82 = arith.constant 6.250000e-02 : f32
    %253 = vector.broadcast %cst_82 : f32 to vector<1x64xf32>
    %254 = arith.mulf %252, %253 : vector<1x64xf32>
    %c6 = arith.constant 6 : index
    %c0_83 = arith.constant 0 : index
    %255 = vector.load %arg2[%c6, %c0_83] : memref<19x128xf32, #tpu.memory_space<vmem>>, vector<1x64xf32>
    %cst_84 = arith.constant 9.99999974E-6 : f32
    %256 = vector.broadcast %cst_84 : f32 to vector<1x64xf32>
    %257 = arith.addf %254, %256 : vector<1x64xf32>
    %258 = math.rsqrt %257 : vector<1x64xf32>
    %259 = arith.mulf %255, %258 : vector<1x64xf32>
    %c7 = arith.constant 7 : index
    %c0_85 = arith.constant 0 : index
    %260 = vector.load %arg2[%c7, %c0_85] : memref<19x128xf32, #tpu.memory_space<vmem>>, vector<1x64xf32>
    %261 = vector.broadcast %259 : vector<1x64xf32> to vector<16x64xf32>
    %262 = arith.mulf %247, %261 : vector<16x64xf32>
    %263 = vector.broadcast %260 : vector<1x64xf32> to vector<16x64xf32>
    %264 = arith.addf %262, %263 : vector<16x64xf32>
    %cst_86 = arith.constant 0.00999999977 : f32
    %265 = vector.broadcast %cst_86 : f32 to vector<16x64xf32>
    %266 = arith.mulf %265, %264 : vector<16x64xf32>
    %267 = arith.maximumf %264, %266 : vector<16x64xf32>
    %268 = vector.extract_strided_slice %267 {offsets = [0, 0], sizes = [4, 64], strides = [1, 1]} : vector<16x64xf32> to vector<4x64xf32>
    %269 = vector.extract_strided_slice %267 {offsets = [4, 0], sizes = [4, 64], strides = [1, 1]} : vector<16x64xf32> to vector<4x64xf32>
    %270 = vector.extract_strided_slice %267 {offsets = [8, 0], sizes = [4, 64], strides = [1, 1]} : vector<16x64xf32> to vector<4x64xf32>
    %271 = vector.extract_strided_slice %267 {offsets = [12, 0], sizes = [4, 64], strides = [1, 1]} : vector<16x64xf32> to vector<4x64xf32>
    %cst_87 = arith.constant 0.000000e+00 : f32
    %272 = vector.broadcast %cst_87 : f32 to vector<1x64xf32>
    %273 = vector.extract_strided_slice %271 {offsets = [0, 0], sizes = [3, 64], strides = [1, 1]} : vector<4x64xf32> to vector<3x64xf32>
    %274 = tpu.concatenate %272, %273 in 0 : vector<1x64xf32>, vector<3x64xf32> -> vector<4x64xf32>
    %275 = tpu.iota {dimensions = array<i32: 0>} : vector<4x1xi32>
    %c2_i32_88 = arith.constant 2 : i32
    %c0_i32_89 = arith.constant 0 : i32
    %276 = arith.cmpi eq, %c2_i32_88, %c0_i32_89 : i32
    %c1_i32_90 = arith.constant 1 : i32
    %277 = arith.select %276, %c1_i32_90, %c2_i32_88 : i32
    %278 = vector.broadcast %277 : i32 to vector<4x1xi32>
    %279 = arith.remsi %275, %278 : vector<4x1xi32>
    %c0_i32_91 = arith.constant 0 : i32
    %280 = vector.broadcast %c0_i32_91 : i32 to vector<4x1xi32>
    %281 = arith.cmpi ne, %279, %280 : vector<4x1xi32>
    %c0_i32_92 = arith.constant 0 : i32
    %282 = vector.broadcast %c0_i32_92 : i32 to vector<4x1xi32>
    %283 = arith.cmpi slt, %279, %282 : vector<4x1xi32>
    %c0_i32_93 = arith.constant 0 : i32
    %284 = arith.cmpi slt, %277, %c0_i32_93 : i32
    %285 = vector.broadcast %284 : i1 to vector<4x1xi1>
    %286 = vector.broadcast %285 : vector<4x1xi1> to vector<4x1xi1>
    %287 = arith.xori %283, %286 : vector<4x1xi1>
    %288 = arith.andi %287, %281 : vector<4x1xi1>
    %289 = vector.broadcast %277 : i32 to vector<4x1xi32>
    %290 = arith.addi %279, %289 : vector<4x1xi32>
    %291 = arith.select %288, %290, %279 : vector<4x1xi1>, vector<4x1xi32>
    %c0_i32_94 = arith.constant 0 : i32
    %292 = vector.broadcast %c0_i32_94 : i32 to vector<4x1xi32>
    %293 = arith.cmpi eq, %291, %292 : vector<4x1xi32>
    %cst_95 = arith.constant 0.000000e+00 : f32
    %294 = vector.broadcast %cst_95 : f32 to vector<4x64xf32>
    %295 = vector.shape_cast %293 : vector<4x1xi1> to vector<4x1xi1>
    %296 = vector.broadcast %295 : vector<4x1xi1> to vector<4x64xi1>
    %297 = arith.select %296, %294, %274 : vector<4x64xi1>, vector<4x64xf32>
    %298 = tpu.concatenate %297, %268, %269 in 1 : vector<4x64xf32>, vector<4x64xf32>, vector<4x64xf32> -> vector<4x192xf32>
    %299 = tpu.concatenate %269, %270, %271 in 1 : vector<4x64xf32>, vector<4x64xf32>, vector<4x64xf32> -> vector<4x192xf32>
    %300 = tpu.concatenate %298, %299 in 0 : vector<4x192xf32>, vector<4x192xf32> -> vector<8x192xf32>
    %301 = arith.truncf %300 : vector<8x192xf32> to vector<8x192xbf16>
    %c1056 = arith.constant 1056 : index
    %c0_96 = arith.constant 0 : index
    %302 = vector.load %arg1[%c1056, %c0_96] : memref<1728x128xbf16, #tpu.memory_space<vmem>>, vector<192x32xbf16>
    %cst_97 = arith.constant dense<0.000000e+00> : vector<8x32xf32>
    %303 = tpu.matmul %301, %302, %cst_97 {dimension_numbers = #tpu.dot_dimension_numbers<[1], [0], [0], [1], [0, 0, 1, 1], [], []>} : vector<8x192xbf16>, vector<192x32xbf16>, vector<8x32xf32> -> vector<8x32xf32>
    %cst_98 = arith.constant dense<0.000000e+00> : vector<32xf32>
    %304 = vector.multi_reduction <add>, %303, %cst_98 [0] : vector<8x32xf32> to vector<32xf32>
    %305 = vector.shape_cast %304 : vector<32xf32> to vector<1x32xf32>
    %cst_99 = arith.constant 0.000000e+00 : f32
    %306 = vector.broadcast %cst_99 : f32 to vector<1x32xf32>
    %307 = arith.addf %306, %305 : vector<1x32xf32>
    %cst_100 = arith.constant 1.250000e-01 : f32
    %308 = vector.broadcast %cst_100 : f32 to vector<1x32xf32>
    %309 = arith.mulf %307, %308 : vector<1x32xf32>
    %310 = vector.broadcast %309 : vector<1x32xf32> to vector<8x32xf32>
    %311 = arith.subf %303, %310 : vector<8x32xf32>
    %312 = arith.mulf %311, %311 : vector<8x32xf32>
    %cst_101 = arith.constant dense<0.000000e+00> : vector<32xf32>
    %313 = vector.multi_reduction <add>, %312, %cst_101 [0] : vector<8x32xf32> to vector<32xf32>
    %314 = vector.shape_cast %313 : vector<32xf32> to vector<1x32xf32>
    %cst_102 = arith.constant 0.000000e+00 : f32
    %315 = vector.broadcast %cst_102 : f32 to vector<1x32xf32>
    %316 = arith.addf %315, %314 : vector<1x32xf32>
    %cst_103 = arith.constant 1.250000e-01 : f32
    %317 = vector.broadcast %cst_103 : f32 to vector<1x32xf32>
    %318 = arith.mulf %316, %317 : vector<1x32xf32>
    %c8 = arith.constant 8 : index
    %c0_104 = arith.constant 0 : index
    %319 = vector.load %arg2[%c8, %c0_104] : memref<19x128xf32, #tpu.memory_space<vmem>>, vector<1x32xf32>
    %cst_105 = arith.constant 9.99999974E-6 : f32
    %320 = vector.broadcast %cst_105 : f32 to vector<1x32xf32>
    %321 = arith.addf %318, %320 : vector<1x32xf32>
    %322 = math.rsqrt %321 : vector<1x32xf32>
    %323 = arith.mulf %319, %322 : vector<1x32xf32>
    %c9 = arith.constant 9 : index
    %c0_106 = arith.constant 0 : index
    %324 = vector.load %arg2[%c9, %c0_106] : memref<19x128xf32, #tpu.memory_space<vmem>>, vector<1x32xf32>
    %325 = vector.broadcast %323 : vector<1x32xf32> to vector<8x32xf32>
    %326 = arith.mulf %311, %325 : vector<8x32xf32>
    %327 = vector.broadcast %324 : vector<1x32xf32> to vector<8x32xf32>
    %328 = arith.addf %326, %327 : vector<8x32xf32>
    %cst_107 = arith.constant 0.00999999977 : f32
    %329 = vector.broadcast %cst_107 : f32 to vector<8x32xf32>
    %330 = arith.mulf %329, %328 : vector<8x32xf32>
    %331 = arith.maximumf %328, %330 : vector<8x32xf32>
    %332 = vector.extract_strided_slice %331 {offsets = [0, 0], sizes = [4, 32], strides = [1, 1]} : vector<8x32xf32> to vector<4x32xf32>
    %333 = vector.extract_strided_slice %331 {offsets = [4, 0], sizes = [4, 32], strides = [1, 1]} : vector<8x32xf32> to vector<4x32xf32>
    %cst_108 = arith.constant 0.000000e+00 : f32
    %334 = vector.broadcast %cst_108 : f32 to vector<1x32xf32>
    %335 = vector.extract_strided_slice %333 {offsets = [0, 0], sizes = [3, 32], strides = [1, 1]} : vector<4x32xf32> to vector<3x32xf32>
    %336 = tpu.concatenate %334, %335 in 0 : vector<1x32xf32>, vector<3x32xf32> -> vector<4x32xf32>
    %337 = tpu.iota {dimensions = array<i32: 0>} : vector<4x1xi32>
    %c2_i32_109 = arith.constant 2 : i32
    %c0_i32_110 = arith.constant 0 : i32
    %338 = arith.cmpi eq, %c2_i32_109, %c0_i32_110 : i32
    %c1_i32_111 = arith.constant 1 : i32
    %339 = arith.select %338, %c1_i32_111, %c2_i32_109 : i32
    %340 = vector.broadcast %339 : i32 to vector<4x1xi32>
    %341 = arith.remsi %337, %340 : vector<4x1xi32>
    %c0_i32_112 = arith.constant 0 : i32
    %342 = vector.broadcast %c0_i32_112 : i32 to vector<4x1xi32>
    %343 = arith.cmpi ne, %341, %342 : vector<4x1xi32>
    %c0_i32_113 = arith.constant 0 : i32
    %344 = vector.broadcast %c0_i32_113 : i32 to vector<4x1xi32>
    %345 = arith.cmpi slt, %341, %344 : vector<4x1xi32>
    %c0_i32_114 = arith.constant 0 : i32
    %346 = arith.cmpi slt, %339, %c0_i32_114 : i32
    %347 = vector.broadcast %346 : i1 to vector<4x1xi1>
    %348 = vector.broadcast %347 : vector<4x1xi1> to vector<4x1xi1>
    %349 = arith.xori %345, %348 : vector<4x1xi1>
    %350 = arith.andi %349, %343 : vector<4x1xi1>
    %351 = vector.broadcast %339 : i32 to vector<4x1xi32>
    %352 = arith.addi %341, %351 : vector<4x1xi32>
    %353 = arith.select %350, %352, %341 : vector<4x1xi1>, vector<4x1xi32>
    %c0_i32_115 = arith.constant 0 : i32
    %354 = vector.broadcast %c0_i32_115 : i32 to vector<4x1xi32>
    %355 = arith.cmpi eq, %353, %354 : vector<4x1xi32>
    %cst_116 = arith.constant 0.000000e+00 : f32
    %356 = vector.broadcast %cst_116 : f32 to vector<4x32xf32>
    %357 = vector.shape_cast %355 : vector<4x1xi1> to vector<4x1xi1>
    %358 = vector.broadcast %357 : vector<4x1xi1> to vector<4x32xi1>
    %359 = arith.select %358, %356, %336 : vector<4x32xi1>, vector<4x32xf32>
    %360 = tpu.concatenate %359, %332, %333 in 1 : vector<4x32xf32>, vector<4x32xf32>, vector<4x32xf32> -> vector<4x96xf32>
    %361 = arith.truncf %360 : vector<4x96xf32> to vector<4x96xbf16>
    %c1248 = arith.constant 1248 : index
    %c0_117 = arith.constant 0 : index
    %362 = vector.load %arg1[%c1248, %c0_117] : memref<1728x128xbf16, #tpu.memory_space<vmem>>, vector<96x16xbf16>
    %cst_118 = arith.constant dense<0.000000e+00> : vector<4x16xf32>
    %363 = tpu.matmul %361, %362, %cst_118 {dimension_numbers = #tpu.dot_dimension_numbers<[1], [0], [0], [1], [0, 0, 1, 1], [], []>} : vector<4x96xbf16>, vector<96x16xbf16>, vector<4x16xf32> -> vector<4x16xf32>
    %cst_119 = arith.constant dense<0.000000e+00> : vector<16xf32>
    %364 = vector.multi_reduction <add>, %363, %cst_119 [0] : vector<4x16xf32> to vector<16xf32>
    %365 = vector.shape_cast %364 : vector<16xf32> to vector<1x16xf32>
    %cst_120 = arith.constant 0.000000e+00 : f32
    %366 = vector.broadcast %cst_120 : f32 to vector<1x16xf32>
    %367 = arith.addf %366, %365 : vector<1x16xf32>
    %cst_121 = arith.constant 2.500000e-01 : f32
    %368 = vector.broadcast %cst_121 : f32 to vector<1x16xf32>
    %369 = arith.mulf %367, %368 : vector<1x16xf32>
    %370 = vector.broadcast %369 : vector<1x16xf32> to vector<4x16xf32>
    %371 = arith.subf %363, %370 : vector<4x16xf32>
    %372 = arith.mulf %371, %371 : vector<4x16xf32>
    %cst_122 = arith.constant dense<0.000000e+00> : vector<16xf32>
    %373 = vector.multi_reduction <add>, %372, %cst_122 [0] : vector<4x16xf32> to vector<16xf32>
    %374 = vector.shape_cast %373 : vector<16xf32> to vector<1x16xf32>
    %cst_123 = arith.constant 0.000000e+00 : f32
    %375 = vector.broadcast %cst_123 : f32 to vector<1x16xf32>
    %376 = arith.addf %375, %374 : vector<1x16xf32>
    %cst_124 = arith.constant 2.500000e-01 : f32
    %377 = vector.broadcast %cst_124 : f32 to vector<1x16xf32>
    %378 = arith.mulf %376, %377 : vector<1x16xf32>
    %c10 = arith.constant 10 : index
    %c0_125 = arith.constant 0 : index
    %379 = vector.load %arg2[%c10, %c0_125] : memref<19x128xf32, #tpu.memory_space<vmem>>, vector<1x16xf32>
    %cst_126 = arith.constant 9.99999974E-6 : f32
    %380 = vector.broadcast %cst_126 : f32 to vector<1x16xf32>
    %381 = arith.addf %378, %380 : vector<1x16xf32>
    %382 = math.rsqrt %381 : vector<1x16xf32>
    %383 = arith.mulf %379, %382 : vector<1x16xf32>
    %c11 = arith.constant 11 : index
    %c0_127 = arith.constant 0 : index
    %384 = vector.load %arg2[%c11, %c0_127] : memref<19x128xf32, #tpu.memory_space<vmem>>, vector<1x16xf32>
    %385 = vector.broadcast %383 : vector<1x16xf32> to vector<4x16xf32>
    %386 = arith.mulf %371, %385 : vector<4x16xf32>
    %387 = vector.broadcast %384 : vector<1x16xf32> to vector<4x16xf32>
    %388 = arith.addf %386, %387 : vector<4x16xf32>
    %cst_128 = arith.constant 0.00999999977 : f32
    %389 = vector.broadcast %cst_128 : f32 to vector<4x16xf32>
    %390 = arith.mulf %389, %388 : vector<4x16xf32>
    %391 = arith.maximumf %388, %390 : vector<4x16xf32>
    %392 = arith.addf %195, %391 : vector<4x16xf32>
    %cst_129 = arith.constant 5.000000e-01 : f32
    %393 = vector.broadcast %cst_129 : f32 to vector<4x16xf32>
    %394 = arith.mulf %392, %393 : vector<4x16xf32>
    %cst_130 = arith.constant 0.000000e+00 : f32
    %395 = vector.broadcast %cst_130 : f32 to vector<1x16xf32>
    %396 = vector.extract_strided_slice %394 {offsets = [0, 0], sizes = [3, 16], strides = [1, 1]} : vector<4x16xf32> to vector<3x16xf32>
    %397 = tpu.concatenate %395, %396 in 0 : vector<1x16xf32>, vector<3x16xf32> -> vector<4x16xf32>
    %398 = tpu.iota {dimensions = array<i32: 0>} : vector<4x1xi32>
    %c2_i32_131 = arith.constant 2 : i32
    %c0_i32_132 = arith.constant 0 : i32
    %399 = arith.cmpi eq, %c2_i32_131, %c0_i32_132 : i32
    %c1_i32_133 = arith.constant 1 : i32
    %400 = arith.select %399, %c1_i32_133, %c2_i32_131 : i32
    %401 = vector.broadcast %400 : i32 to vector<4x1xi32>
    %402 = arith.remsi %398, %401 : vector<4x1xi32>
    %c0_i32_134 = arith.constant 0 : i32
    %403 = vector.broadcast %c0_i32_134 : i32 to vector<4x1xi32>
    %404 = arith.cmpi ne, %402, %403 : vector<4x1xi32>
    %c0_i32_135 = arith.constant 0 : i32
    %405 = vector.broadcast %c0_i32_135 : i32 to vector<4x1xi32>
    %406 = arith.cmpi slt, %402, %405 : vector<4x1xi32>
    %c0_i32_136 = arith.constant 0 : i32
    %407 = arith.cmpi slt, %400, %c0_i32_136 : i32
    %408 = vector.broadcast %407 : i1 to vector<4x1xi1>
    %409 = vector.broadcast %408 : vector<4x1xi1> to vector<4x1xi1>
    %410 = arith.xori %406, %409 : vector<4x1xi1>
    %411 = arith.andi %410, %404 : vector<4x1xi1>
    %412 = vector.broadcast %400 : i32 to vector<4x1xi32>
    %413 = arith.addi %402, %412 : vector<4x1xi32>
    %414 = arith.select %411, %413, %402 : vector<4x1xi1>, vector<4x1xi32>
    %c0_i32_137 = arith.constant 0 : i32
    %415 = vector.broadcast %c0_i32_137 : i32 to vector<4x1xi32>
    %416 = arith.cmpi eq, %414, %415 : vector<4x1xi32>
    %cst_138 = arith.constant 0.000000e+00 : f32
    %417 = vector.broadcast %cst_138 : f32 to vector<4x16xf32>
    %418 = vector.shape_cast %416 : vector<4x1xi1> to vector<4x1xi1>
    %419 = vector.broadcast %418 : vector<4x1xi1> to vector<4x16xi1>
    %420 = arith.select %419, %417, %397 : vector<4x16xi1>, vector<4x16xf32>
    %421 = vector.extract_strided_slice %394 {offsets = [1, 0], sizes = [3, 16], strides = [1, 1]} : vector<4x16xf32> to vector<3x16xf32>
    %cst_139 = arith.constant 0.000000e+00 : f32
    %422 = vector.broadcast %cst_139 : f32 to vector<1x16xf32>
    %423 = tpu.concatenate %421, %422 in 0 : vector<3x16xf32>, vector<1x16xf32> -> vector<4x16xf32>
    %424 = tpu.iota {dimensions = array<i32: 0>} : vector<4x1xi32>
    %c2_i32_140 = arith.constant 2 : i32
    %c0_i32_141 = arith.constant 0 : i32
    %425 = arith.cmpi eq, %c2_i32_140, %c0_i32_141 : i32
    %c1_i32_142 = arith.constant 1 : i32
    %426 = arith.select %425, %c1_i32_142, %c2_i32_140 : i32
    %427 = vector.broadcast %426 : i32 to vector<4x1xi32>
    %428 = arith.remsi %424, %427 : vector<4x1xi32>
    %c0_i32_143 = arith.constant 0 : i32
    %429 = vector.broadcast %c0_i32_143 : i32 to vector<4x1xi32>
    %430 = arith.cmpi ne, %428, %429 : vector<4x1xi32>
    %c0_i32_144 = arith.constant 0 : i32
    %431 = vector.broadcast %c0_i32_144 : i32 to vector<4x1xi32>
    %432 = arith.cmpi slt, %428, %431 : vector<4x1xi32>
    %c0_i32_145 = arith.constant 0 : i32
    %433 = arith.cmpi slt, %426, %c0_i32_145 : i32
    %434 = vector.broadcast %433 : i1 to vector<4x1xi1>
    %435 = vector.broadcast %434 : vector<4x1xi1> to vector<4x1xi1>
    %436 = arith.xori %432, %435 : vector<4x1xi1>
    %437 = arith.andi %436, %430 : vector<4x1xi1>
    %438 = vector.broadcast %426 : i32 to vector<4x1xi32>
    %439 = arith.addi %428, %438 : vector<4x1xi32>
    %440 = arith.select %437, %439, %428 : vector<4x1xi1>, vector<4x1xi32>
    %c1_i32_146 = arith.constant 1 : i32
    %441 = vector.broadcast %c1_i32_146 : i32 to vector<4x1xi32>
    %442 = arith.cmpi eq, %440, %441 : vector<4x1xi32>
    %cst_147 = arith.constant 0.000000e+00 : f32
    %443 = vector.broadcast %cst_147 : f32 to vector<4x16xf32>
    %444 = vector.shape_cast %442 : vector<4x1xi1> to vector<4x1xi1>
    %445 = vector.broadcast %444 : vector<4x1xi1> to vector<4x16xi1>
    %446 = arith.select %445, %443, %423 : vector<4x16xi1>, vector<4x16xf32>
    %447 = tpu.concatenate %420, %394, %446 in 1 : vector<4x16xf32>, vector<4x16xf32>, vector<4x16xf32> -> vector<4x48xf32>
    %448 = arith.truncf %447 : vector<4x48xf32> to vector<4x48xbf16>
    %c1344 = arith.constant 1344 : index
    %c0_148 = arith.constant 0 : index
    %449 = vector.load %arg1[%c1344, %c0_148] : memref<1728x128xbf16, #tpu.memory_space<vmem>>, vector<48x16xbf16>
    %cst_149 = arith.constant dense<0.000000e+00> : vector<4x16xf32>
    %450 = tpu.matmul %448, %449, %cst_149 {dimension_numbers = #tpu.dot_dimension_numbers<[1], [0], [0], [1], [0, 0, 1, 1], [], []>} : vector<4x48xbf16>, vector<48x16xbf16>, vector<4x16xf32> -> vector<4x16xf32>
    %cst_150 = arith.constant dense<0.000000e+00> : vector<16xf32>
    %451 = vector.multi_reduction <add>, %450, %cst_150 [0] : vector<4x16xf32> to vector<16xf32>
    %452 = vector.shape_cast %451 : vector<16xf32> to vector<1x16xf32>
    %cst_151 = arith.constant 0.000000e+00 : f32
    %453 = vector.broadcast %cst_151 : f32 to vector<1x16xf32>
    %454 = arith.addf %453, %452 : vector<1x16xf32>
    %cst_152 = arith.constant 2.500000e-01 : f32
    %455 = vector.broadcast %cst_152 : f32 to vector<1x16xf32>
    %456 = arith.mulf %454, %455 : vector<1x16xf32>
    %457 = vector.broadcast %456 : vector<1x16xf32> to vector<4x16xf32>
    %458 = arith.subf %450, %457 : vector<4x16xf32>
    %459 = arith.mulf %458, %458 : vector<4x16xf32>
    %cst_153 = arith.constant dense<0.000000e+00> : vector<16xf32>
    %460 = vector.multi_reduction <add>, %459, %cst_153 [0] : vector<4x16xf32> to vector<16xf32>
    %461 = vector.shape_cast %460 : vector<16xf32> to vector<1x16xf32>
    %cst_154 = arith.constant 0.000000e+00 : f32
    %462 = vector.broadcast %cst_154 : f32 to vector<1x16xf32>
    %463 = arith.addf %462, %461 : vector<1x16xf32>
    %cst_155 = arith.constant 2.500000e-01 : f32
    %464 = vector.broadcast %cst_155 : f32 to vector<1x16xf32>
    %465 = arith.mulf %463, %464 : vector<1x16xf32>
    %c12 = arith.constant 12 : index
    %c0_156 = arith.constant 0 : index
    %466 = vector.load %arg2[%c12, %c0_156] : memref<19x128xf32, #tpu.memory_space<vmem>>, vector<1x16xf32>
    %cst_157 = arith.constant 9.99999974E-6 : f32
    %467 = vector.broadcast %cst_157 : f32 to vector<1x16xf32>
    %468 = arith.addf %465, %467 : vector<1x16xf32>
    %469 = math.rsqrt %468 : vector<1x16xf32>
    %470 = arith.mulf %466, %469 : vector<1x16xf32>
    %c13 = arith.constant 13 : index
    %c0_158 = arith.constant 0 : index
    %471 = vector.load %arg2[%c13, %c0_158] : memref<19x128xf32, #tpu.memory_space<vmem>>, vector<1x16xf32>
    %472 = vector.broadcast %470 : vector<1x16xf32> to vector<4x16xf32>
    %473 = arith.mulf %458, %472 : vector<4x16xf32>
    %474 = vector.broadcast %471 : vector<1x16xf32> to vector<4x16xf32>
    %475 = arith.addf %473, %474 : vector<4x16xf32>
    %cst_159 = arith.constant 0.00999999977 : f32
    %476 = vector.broadcast %cst_159 : f32 to vector<4x16xf32>
    %477 = arith.mulf %476, %475 : vector<4x16xf32>
    %478 = arith.maximumf %475, %477 : vector<4x16xf32>
    %479 = arith.truncf %478 : vector<4x16xf32> to vector<4x16xbf16>
    %c1392 = arith.constant 1392 : index
    %c0_160 = arith.constant 0 : index
    %480 = vector.load %arg1[%c1392, %c0_160] : memref<1728x128xbf16, #tpu.memory_space<vmem>>, vector<16x32xbf16>
    %cst_161 = arith.constant dense<0.000000e+00> : vector<4x32xf32>
    %481 = tpu.matmul %479, %480, %cst_161 {dimension_numbers = #tpu.dot_dimension_numbers<[1], [0], [0], [1], [0, 0, 1, 1], [], []>} : vector<4x16xbf16>, vector<16x32xbf16>, vector<4x32xf32> -> vector<4x32xf32>
    %482 = vector.extract_strided_slice %478 {offsets = [1, 0], sizes = [3, 16], strides = [1, 1]} : vector<4x16xf32> to vector<3x16xf32>
    %cst_162 = arith.constant 0.000000e+00 : f32
    %483 = vector.broadcast %cst_162 : f32 to vector<1x16xf32>
    %484 = tpu.concatenate %482, %483 in 0 : vector<3x16xf32>, vector<1x16xf32> -> vector<4x16xf32>
    %485 = tpu.iota {dimensions = array<i32: 0>} : vector<4x1xi32>
    %c2_i32_163 = arith.constant 2 : i32
    %c0_i32_164 = arith.constant 0 : i32
    %486 = arith.cmpi eq, %c2_i32_163, %c0_i32_164 : i32
    %c1_i32_165 = arith.constant 1 : i32
    %487 = arith.select %486, %c1_i32_165, %c2_i32_163 : i32
    %488 = vector.broadcast %487 : i32 to vector<4x1xi32>
    %489 = arith.remsi %485, %488 : vector<4x1xi32>
    %c0_i32_166 = arith.constant 0 : i32
    %490 = vector.broadcast %c0_i32_166 : i32 to vector<4x1xi32>
    %491 = arith.cmpi ne, %489, %490 : vector<4x1xi32>
    %c0_i32_167 = arith.constant 0 : i32
    %492 = vector.broadcast %c0_i32_167 : i32 to vector<4x1xi32>
    %493 = arith.cmpi slt, %489, %492 : vector<4x1xi32>
    %c0_i32_168 = arith.constant 0 : i32
    %494 = arith.cmpi slt, %487, %c0_i32_168 : i32
    %495 = vector.broadcast %494 : i1 to vector<4x1xi1>
    %496 = vector.broadcast %495 : vector<4x1xi1> to vector<4x1xi1>
    %497 = arith.xori %493, %496 : vector<4x1xi1>
    %498 = arith.andi %497, %491 : vector<4x1xi1>
    %499 = vector.broadcast %487 : i32 to vector<4x1xi32>
    %500 = arith.addi %489, %499 : vector<4x1xi32>
    %501 = arith.select %498, %500, %489 : vector<4x1xi1>, vector<4x1xi32>
    %c1_i32_169 = arith.constant 1 : i32
    %502 = vector.broadcast %c1_i32_169 : i32 to vector<4x1xi32>
    %503 = arith.cmpi eq, %501, %502 : vector<4x1xi32>
    %cst_170 = arith.constant 0.000000e+00 : f32
    %504 = vector.broadcast %cst_170 : f32 to vector<4x16xf32>
    %505 = vector.shape_cast %503 : vector<4x1xi1> to vector<4x1xi1>
    %506 = vector.broadcast %505 : vector<4x1xi1> to vector<4x16xi1>
    %507 = arith.select %506, %504, %484 : vector<4x16xi1>, vector<4x16xf32>
    %508 = tpu.concatenate %507, %478 in 1 : vector<4x16xf32>, vector<4x16xf32> -> vector<4x32xf32>
    %509 = arith.truncf %508 : vector<4x32xf32> to vector<4x32xbf16>
    %c1408 = arith.constant 1408 : index
    %c0_171 = arith.constant 0 : index
    %510 = vector.load %arg1[%c1408, %c0_171] : memref<1728x128xbf16, #tpu.memory_space<vmem>>, vector<32x32xbf16>
    %cst_172 = arith.constant dense<0.000000e+00> : vector<4x32xf32>
    %511 = tpu.matmul %509, %510, %cst_172 {dimension_numbers = #tpu.dot_dimension_numbers<[1], [0], [0], [1], [0, 0, 1, 1], [], []>} : vector<4x32xbf16>, vector<32x32xbf16>, vector<4x32xf32> -> vector<4x32xf32>
    %cst_173 = arith.constant dense<0.000000e+00> : vector<32xf32>
    %512 = vector.multi_reduction <add>, %481, %cst_173 [0] : vector<4x32xf32> to vector<32xf32>
    %513 = vector.shape_cast %512 : vector<32xf32> to vector<1x32xf32>
    %cst_174 = arith.constant 0.000000e+00 : f32
    %514 = vector.broadcast %cst_174 : f32 to vector<1x32xf32>
    %515 = arith.addf %514, %513 : vector<1x32xf32>
    %cst_175 = arith.constant dense<0.000000e+00> : vector<32xf32>
    %516 = vector.multi_reduction <add>, %511, %cst_175 [0] : vector<4x32xf32> to vector<32xf32>
    %517 = vector.shape_cast %516 : vector<32xf32> to vector<1x32xf32>
    %518 = arith.addf %515, %517 : vector<1x32xf32>
    %cst_176 = arith.constant 1.250000e-01 : f32
    %519 = vector.broadcast %cst_176 : f32 to vector<1x32xf32>
    %520 = arith.mulf %518, %519 : vector<1x32xf32>
    %521 = vector.broadcast %520 : vector<1x32xf32> to vector<4x32xf32>
    %522 = arith.subf %481, %521 : vector<4x32xf32>
    %523 = vector.broadcast %520 : vector<1x32xf32> to vector<4x32xf32>
    %524 = arith.subf %511, %523 : vector<4x32xf32>
    %525 = arith.mulf %522, %522 : vector<4x32xf32>
    %cst_177 = arith.constant dense<0.000000e+00> : vector<32xf32>
    %526 = vector.multi_reduction <add>, %525, %cst_177 [0] : vector<4x32xf32> to vector<32xf32>
    %527 = vector.shape_cast %526 : vector<32xf32> to vector<1x32xf32>
    %cst_178 = arith.constant 0.000000e+00 : f32
    %528 = vector.broadcast %cst_178 : f32 to vector<1x32xf32>
    %529 = arith.addf %528, %527 : vector<1x32xf32>
    %530 = arith.mulf %524, %524 : vector<4x32xf32>
    %cst_179 = arith.constant dense<0.000000e+00> : vector<32xf32>
    %531 = vector.multi_reduction <add>, %530, %cst_179 [0] : vector<4x32xf32> to vector<32xf32>
    %532 = vector.shape_cast %531 : vector<32xf32> to vector<1x32xf32>
    %533 = arith.addf %529, %532 : vector<1x32xf32>
    %cst_180 = arith.constant 1.250000e-01 : f32
    %534 = vector.broadcast %cst_180 : f32 to vector<1x32xf32>
    %535 = arith.mulf %533, %534 : vector<1x32xf32>
    %c14 = arith.constant 14 : index
    %c0_181 = arith.constant 0 : index
    %536 = vector.load %arg2[%c14, %c0_181] : memref<19x128xf32, #tpu.memory_space<vmem>>, vector<1x32xf32>
    %cst_182 = arith.constant 9.99999974E-6 : f32
    %537 = vector.broadcast %cst_182 : f32 to vector<1x32xf32>
    %538 = arith.addf %535, %537 : vector<1x32xf32>
    %539 = math.rsqrt %538 : vector<1x32xf32>
    %540 = arith.mulf %536, %539 : vector<1x32xf32>
    %c15 = arith.constant 15 : index
    %c0_183 = arith.constant 0 : index
    %541 = vector.load %arg2[%c15, %c0_183] : memref<19x128xf32, #tpu.memory_space<vmem>>, vector<1x32xf32>
    %542 = vector.broadcast %540 : vector<1x32xf32> to vector<4x32xf32>
    %543 = arith.mulf %522, %542 : vector<4x32xf32>
    %544 = vector.broadcast %541 : vector<1x32xf32> to vector<4x32xf32>
    %545 = arith.addf %543, %544 : vector<4x32xf32>
    %cst_184 = arith.constant 0.00999999977 : f32
    %546 = vector.broadcast %cst_184 : f32 to vector<4x32xf32>
    %547 = arith.mulf %546, %545 : vector<4x32xf32>
    %548 = arith.maximumf %545, %547 : vector<4x32xf32>
    %549 = vector.broadcast %540 : vector<1x32xf32> to vector<4x32xf32>
    %550 = arith.mulf %524, %549 : vector<4x32xf32>
    %551 = vector.broadcast %541 : vector<1x32xf32> to vector<4x32xf32>
    %552 = arith.addf %550, %551 : vector<4x32xf32>
    %cst_185 = arith.constant 0.00999999977 : f32
    %553 = vector.broadcast %cst_185 : f32 to vector<4x32xf32>
    %554 = arith.mulf %553, %552 : vector<4x32xf32>
    %555 = arith.maximumf %552, %554 : vector<4x32xf32>
    %556 = tpu.concatenate %548, %555 in 0 : vector<4x32xf32>, vector<4x32xf32> -> vector<8x32xf32>
    %557 = arith.truncf %556 : vector<8x32xf32> to vector<8x32xbf16>
    %c1440 = arith.constant 1440 : index
    %c0_186 = arith.constant 0 : index
    %558 = vector.load %arg1[%c1440, %c0_186] : memref<1728x128xbf16, #tpu.memory_space<vmem>>, vector<32x64xbf16>
    %cst_187 = arith.constant dense<0.000000e+00> : vector<8x64xf32>
    %559 = tpu.matmul %557, %558, %cst_187 {dimension_numbers = #tpu.dot_dimension_numbers<[1], [0], [0], [1], [0, 0, 1, 1], [], []>} : vector<8x32xbf16>, vector<32x64xbf16>, vector<8x64xf32> -> vector<8x64xf32>
    %560 = tpu.concatenate %555, %548 in 1 : vector<4x32xf32>, vector<4x32xf32> -> vector<4x64xf32>
    %561 = vector.extract_strided_slice %548 {offsets = [1, 0], sizes = [3, 32], strides = [1, 1]} : vector<4x32xf32> to vector<3x32xf32>
    %cst_188 = arith.constant 0.000000e+00 : f32
    %562 = vector.broadcast %cst_188 : f32 to vector<1x32xf32>
    %563 = tpu.concatenate %561, %562 in 0 : vector<3x32xf32>, vector<1x32xf32> -> vector<4x32xf32>
    %564 = tpu.iota {dimensions = array<i32: 0>} : vector<4x1xi32>
    %c2_i32_189 = arith.constant 2 : i32
    %c0_i32_190 = arith.constant 0 : i32
    %565 = arith.cmpi eq, %c2_i32_189, %c0_i32_190 : i32
    %c1_i32_191 = arith.constant 1 : i32
    %566 = arith.select %565, %c1_i32_191, %c2_i32_189 : i32
    %567 = vector.broadcast %566 : i32 to vector<4x1xi32>
    %568 = arith.remsi %564, %567 : vector<4x1xi32>
    %c0_i32_192 = arith.constant 0 : i32
    %569 = vector.broadcast %c0_i32_192 : i32 to vector<4x1xi32>
    %570 = arith.cmpi ne, %568, %569 : vector<4x1xi32>
    %c0_i32_193 = arith.constant 0 : i32
    %571 = vector.broadcast %c0_i32_193 : i32 to vector<4x1xi32>
    %572 = arith.cmpi slt, %568, %571 : vector<4x1xi32>
    %c0_i32_194 = arith.constant 0 : i32
    %573 = arith.cmpi slt, %566, %c0_i32_194 : i32
    %574 = vector.broadcast %573 : i1 to vector<4x1xi1>
    %575 = vector.broadcast %574 : vector<4x1xi1> to vector<4x1xi1>
    %576 = arith.xori %572, %575 : vector<4x1xi1>
    %577 = arith.andi %576, %570 : vector<4x1xi1>
    %578 = vector.broadcast %566 : i32 to vector<4x1xi32>
    %579 = arith.addi %568, %578 : vector<4x1xi32>
    %580 = arith.select %577, %579, %568 : vector<4x1xi1>, vector<4x1xi32>
    %c1_i32_195 = arith.constant 1 : i32
    %581 = vector.broadcast %c1_i32_195 : i32 to vector<4x1xi32>
    %582 = arith.cmpi eq, %580, %581 : vector<4x1xi32>
    %cst_196 = arith.constant 0.000000e+00 : f32
    %583 = vector.broadcast %cst_196 : f32 to vector<4x32xf32>
    %584 = vector.shape_cast %582 : vector<4x1xi1> to vector<4x1xi1>
    %585 = vector.broadcast %584 : vector<4x1xi1> to vector<4x32xi1>
    %586 = arith.select %585, %583, %563 : vector<4x32xi1>, vector<4x32xf32>
    %587 = tpu.concatenate %586, %555 in 1 : vector<4x32xf32>, vector<4x32xf32> -> vector<4x64xf32>
    %588 = tpu.concatenate %560, %587 in 0 : vector<4x64xf32>, vector<4x64xf32> -> vector<8x64xf32>
    %589 = arith.truncf %588 : vector<8x64xf32> to vector<8x64xbf16>
    %c1472 = arith.constant 1472 : index
    %c0_197 = arith.constant 0 : index
    %590 = vector.load %arg1[%c1472, %c0_197] : memref<1728x128xbf16, #tpu.memory_space<vmem>>, vector<64x64xbf16>
    %cst_198 = arith.constant dense<0.000000e+00> : vector<8x64xf32>
    %591 = tpu.matmul %589, %590, %cst_198 {dimension_numbers = #tpu.dot_dimension_numbers<[1], [0], [0], [1], [0, 0, 1, 1], [], []>} : vector<8x64xbf16>, vector<64x64xbf16>, vector<8x64xf32> -> vector<8x64xf32>
    %cst_199 = arith.constant dense<0.000000e+00> : vector<64xf32>
    %592 = vector.multi_reduction <add>, %559, %cst_199 [0] : vector<8x64xf32> to vector<64xf32>
    %593 = vector.shape_cast %592 : vector<64xf32> to vector<1x64xf32>
    %cst_200 = arith.constant 0.000000e+00 : f32
    %594 = vector.broadcast %cst_200 : f32 to vector<1x64xf32>
    %595 = arith.addf %594, %593 : vector<1x64xf32>
    %cst_201 = arith.constant dense<0.000000e+00> : vector<64xf32>
    %596 = vector.multi_reduction <add>, %591, %cst_201 [0] : vector<8x64xf32> to vector<64xf32>
    %597 = vector.shape_cast %596 : vector<64xf32> to vector<1x64xf32>
    %598 = arith.addf %595, %597 : vector<1x64xf32>
    %cst_202 = arith.constant 6.250000e-02 : f32
    %599 = vector.broadcast %cst_202 : f32 to vector<1x64xf32>
    %600 = arith.mulf %598, %599 : vector<1x64xf32>
    %601 = vector.broadcast %600 : vector<1x64xf32> to vector<8x64xf32>
    %602 = arith.subf %559, %601 : vector<8x64xf32>
    %603 = vector.broadcast %600 : vector<1x64xf32> to vector<8x64xf32>
    %604 = arith.subf %591, %603 : vector<8x64xf32>
    %605 = arith.mulf %602, %602 : vector<8x64xf32>
    %cst_203 = arith.constant dense<0.000000e+00> : vector<64xf32>
    %606 = vector.multi_reduction <add>, %605, %cst_203 [0] : vector<8x64xf32> to vector<64xf32>
    %607 = vector.shape_cast %606 : vector<64xf32> to vector<1x64xf32>
    %cst_204 = arith.constant 0.000000e+00 : f32
    %608 = vector.broadcast %cst_204 : f32 to vector<1x64xf32>
    %609 = arith.addf %608, %607 : vector<1x64xf32>
    %610 = arith.mulf %604, %604 : vector<8x64xf32>
    %cst_205 = arith.constant dense<0.000000e+00> : vector<64xf32>
    %611 = vector.multi_reduction <add>, %610, %cst_205 [0] : vector<8x64xf32> to vector<64xf32>
    %612 = vector.shape_cast %611 : vector<64xf32> to vector<1x64xf32>
    %613 = arith.addf %609, %612 : vector<1x64xf32>
    %cst_206 = arith.constant 6.250000e-02 : f32
    %614 = vector.broadcast %cst_206 : f32 to vector<1x64xf32>
    %615 = arith.mulf %613, %614 : vector<1x64xf32>
    %c16 = arith.constant 16 : index
    %c0_207 = arith.constant 0 : index
    %616 = vector.load %arg2[%c16, %c0_207] : memref<19x128xf32, #tpu.memory_space<vmem>>, vector<1x64xf32>
    %cst_208 = arith.constant 9.99999974E-6 : f32
    %617 = vector.broadcast %cst_208 : f32 to vector<1x64xf32>
    %618 = arith.addf %615, %617 : vector<1x64xf32>
    %619 = math.rsqrt %618 : vector<1x64xf32>
    %620 = arith.mulf %616, %619 : vector<1x64xf32>
    %c17 = arith.constant 17 : index
    %c0_209 = arith.constant 0 : index
    %621 = vector.load %arg2[%c17, %c0_209] : memref<19x128xf32, #tpu.memory_space<vmem>>, vector<1x64xf32>
    %622 = vector.broadcast %620 : vector<1x64xf32> to vector<8x64xf32>
    %623 = arith.mulf %602, %622 : vector<8x64xf32>
    %624 = vector.broadcast %621 : vector<1x64xf32> to vector<8x64xf32>
    %625 = arith.addf %623, %624 : vector<8x64xf32>
    %cst_210 = arith.constant 0.00999999977 : f32
    %626 = vector.broadcast %cst_210 : f32 to vector<8x64xf32>
    %627 = arith.mulf %626, %625 : vector<8x64xf32>
    %628 = arith.maximumf %625, %627 : vector<8x64xf32>
    %629 = vector.broadcast %620 : vector<1x64xf32> to vector<8x64xf32>
    %630 = arith.mulf %604, %629 : vector<8x64xf32>
    %631 = vector.broadcast %621 : vector<1x64xf32> to vector<8x64xf32>
    %632 = arith.addf %630, %631 : vector<8x64xf32>
    %cst_211 = arith.constant 0.00999999977 : f32
    %633 = vector.broadcast %cst_211 : f32 to vector<8x64xf32>
    %634 = arith.mulf %633, %632 : vector<8x64xf32>
    %635 = arith.maximumf %632, %634 : vector<8x64xf32>
    %636 = vector.extract_strided_slice %628 {offsets = [0, 0], sizes = [4, 64], strides = [1, 1]} : vector<8x64xf32> to vector<4x64xf32>
    %637 = vector.extract_strided_slice %635 {offsets = [0, 0], sizes = [4, 64], strides = [1, 1]} : vector<8x64xf32> to vector<4x64xf32>
    %638 = vector.extract_strided_slice %628 {offsets = [4, 0], sizes = [4, 64], strides = [1, 1]} : vector<8x64xf32> to vector<4x64xf32>
    %639 = vector.extract_strided_slice %635 {offsets = [4, 0], sizes = [4, 64], strides = [1, 1]} : vector<8x64xf32> to vector<4x64xf32>
    %640 = tpu.concatenate %636, %637, %638, %639 in 0 : vector<4x64xf32>, vector<4x64xf32>, vector<4x64xf32>, vector<4x64xf32> -> vector<16x64xf32>
    %641 = arith.truncf %640 : vector<16x64xf32> to vector<16x64xbf16>
    %c1536 = arith.constant 1536 : index
    %c0_212 = arith.constant 0 : index
    %642 = vector.load %arg1[%c1536, %c0_212] : memref<1728x128xbf16, #tpu.memory_space<vmem>>, vector<64x128xbf16>
    %cst_213 = arith.constant dense<0.000000e+00> : vector<16x128xf32>
    %643 = tpu.matmul %641, %642, %cst_213 {dimension_numbers = #tpu.dot_dimension_numbers<[1], [0], [0], [1], [0, 0, 1, 1], [], []>} : vector<16x64xbf16>, vector<64x128xbf16>, vector<16x128xf32> -> vector<16x128xf32>
    %644 = tpu.concatenate %637, %636 in 1 : vector<4x64xf32>, vector<4x64xf32> -> vector<4x128xf32>
    %645 = tpu.concatenate %638, %637 in 1 : vector<4x64xf32>, vector<4x64xf32> -> vector<4x128xf32>
    %646 = tpu.concatenate %639, %638 in 1 : vector<4x64xf32>, vector<4x64xf32> -> vector<4x128xf32>
    %647 = vector.extract_strided_slice %636 {offsets = [1, 0], sizes = [3, 64], strides = [1, 1]} : vector<4x64xf32> to vector<3x64xf32>
    %cst_214 = arith.constant 0.000000e+00 : f32
    %648 = vector.broadcast %cst_214 : f32 to vector<1x64xf32>
    %649 = tpu.concatenate %647, %648 in 0 : vector<3x64xf32>, vector<1x64xf32> -> vector<4x64xf32>
    %650 = tpu.iota {dimensions = array<i32: 0>} : vector<4x1xi32>
    %c2_i32_215 = arith.constant 2 : i32
    %c0_i32_216 = arith.constant 0 : i32
    %651 = arith.cmpi eq, %c2_i32_215, %c0_i32_216 : i32
    %c1_i32_217 = arith.constant 1 : i32
    %652 = arith.select %651, %c1_i32_217, %c2_i32_215 : i32
    %653 = vector.broadcast %652 : i32 to vector<4x1xi32>
    %654 = arith.remsi %650, %653 : vector<4x1xi32>
    %c0_i32_218 = arith.constant 0 : i32
    %655 = vector.broadcast %c0_i32_218 : i32 to vector<4x1xi32>
    %656 = arith.cmpi ne, %654, %655 : vector<4x1xi32>
    %c0_i32_219 = arith.constant 0 : i32
    %657 = vector.broadcast %c0_i32_219 : i32 to vector<4x1xi32>
    %658 = arith.cmpi slt, %654, %657 : vector<4x1xi32>
    %c0_i32_220 = arith.constant 0 : i32
    %659 = arith.cmpi slt, %652, %c0_i32_220 : i32
    %660 = vector.broadcast %659 : i1 to vector<4x1xi1>
    %661 = vector.broadcast %660 : vector<4x1xi1> to vector<4x1xi1>
    %662 = arith.xori %658, %661 : vector<4x1xi1>
    %663 = arith.andi %662, %656 : vector<4x1xi1>
    %664 = vector.broadcast %652 : i32 to vector<4x1xi32>
    %665 = arith.addi %654, %664 : vector<4x1xi32>
    %666 = arith.select %663, %665, %654 : vector<4x1xi1>, vector<4x1xi32>
    %c1_i32_221 = arith.constant 1 : i32
    %667 = vector.broadcast %c1_i32_221 : i32 to vector<4x1xi32>
    %668 = arith.cmpi eq, %666, %667 : vector<4x1xi32>
    %cst_222 = arith.constant 0.000000e+00 : f32
    %669 = vector.broadcast %cst_222 : f32 to vector<4x64xf32>
    %670 = vector.shape_cast %668 : vector<4x1xi1> to vector<4x1xi1>
    %671 = vector.broadcast %670 : vector<4x1xi1> to vector<4x64xi1>
    %672 = arith.select %671, %669, %649 : vector<4x64xi1>, vector<4x64xf32>
    %673 = tpu.concatenate %672, %639 in 1 : vector<4x64xf32>, vector<4x64xf32> -> vector<4x128xf32>
    %674 = tpu.concatenate %644, %645, %646, %673 in 0 : vector<4x128xf32>, vector<4x128xf32>, vector<4x128xf32>, vector<4x128xf32> -> vector<16x128xf32>
    %675 = arith.truncf %674 : vector<16x128xf32> to vector<16x128xbf16>
    %c1600 = arith.constant 1600 : index
    %c0_223 = arith.constant 0 : index
    %676 = vector.load %arg1[%c1600, %c0_223] : memref<1728x128xbf16, #tpu.memory_space<vmem>>, vector<128x128xbf16>
    %cst_224 = arith.constant dense<0.000000e+00> : vector<16x128xf32>
    %677 = tpu.matmul %675, %676, %cst_224 {dimension_numbers = #tpu.dot_dimension_numbers<[1], [0], [0], [1], [0, 0, 1, 1], [], []>} : vector<16x128xbf16>, vector<128x128xbf16>, vector<16x128xf32> -> vector<16x128xf32>
    %c18 = arith.constant 18 : index
    %c0_225 = arith.constant 0 : index
    %678 = vector.load %arg2[%c18, %c0_225] : memref<19x128xf32, #tpu.memory_space<vmem>>, vector<1x128xf32>
    %679 = vector.broadcast %678 : vector<1x128xf32> to vector<16x128xf32>
    %680 = arith.addf %643, %679 : vector<16x128xf32>
    %681 = vector.broadcast %678 : vector<1x128xf32> to vector<16x128xf32>
    %682 = arith.addf %677, %681 : vector<16x128xf32>
    %683 = vector.extract_strided_slice %680 {offsets = [0, 0], sizes = [4, 128], strides = [1, 1]} : vector<16x128xf32> to vector<4x128xf32>
    %684 = vector.extract_strided_slice %682 {offsets = [0, 0], sizes = [4, 128], strides = [1, 1]} : vector<16x128xf32> to vector<4x128xf32>
    %685 = vector.extract_strided_slice %680 {offsets = [4, 0], sizes = [4, 128], strides = [1, 1]} : vector<16x128xf32> to vector<4x128xf32>
    %686 = vector.extract_strided_slice %682 {offsets = [4, 0], sizes = [4, 128], strides = [1, 1]} : vector<16x128xf32> to vector<4x128xf32>
    %687 = vector.extract_strided_slice %680 {offsets = [8, 0], sizes = [4, 128], strides = [1, 1]} : vector<16x128xf32> to vector<4x128xf32>
    %688 = vector.extract_strided_slice %682 {offsets = [8, 0], sizes = [4, 128], strides = [1, 1]} : vector<16x128xf32> to vector<4x128xf32>
    %689 = vector.extract_strided_slice %680 {offsets = [12, 0], sizes = [4, 128], strides = [1, 1]} : vector<16x128xf32> to vector<4x128xf32>
    %690 = vector.extract_strided_slice %682 {offsets = [12, 0], sizes = [4, 128], strides = [1, 1]} : vector<16x128xf32> to vector<4x128xf32>
    %691 = tpu.concatenate %683, %684, %685, %686, %687, %688, %689, %690 in 0 : vector<4x128xf32>, vector<4x128xf32>, vector<4x128xf32>, vector<4x128xf32>, vector<4x128xf32>, vector<4x128xf32>, vector<4x128xf32>, vector<4x128xf32> -> vector<32x128xf32>
    %c0_226 = arith.constant 0 : index
    %c0_227 = arith.constant 0 : index
    %692 = vector.load %arg3[%c0_226, %c0_227] : memref<32x128xf32, #tpu.memory_space<vmem>>, vector<32x128xf32>
    tpu.vector_store %arg3[%c0_226, %c0_227], %691 {strides = array<i32>} : memref<32x128xf32, #tpu.memory_space<vmem>>, vector<32x128xf32>,
    return
  }
}

</mosaic_0001>

<bundles_post_ra>
// kernel: g_net_forward.1
= control target key start
LH: loop header
LB: loop body
LE: loop exit
PB: predicated region body
PF: predicated region fallthrough
CT: control target
= control target key end

     0   :  { %v24_v9 = vlaneseq  ;;  %vm22_vm0 = vcmask 1040384   ;;  %vm55_vm2 = vcmask 1043456   ;;  %vm299_vm3 = vcmask 523264   ;;  %s2470_s6 = smov 64   ;;  %s2471_s30 = smov 32   ;;  %s3085_s1 = inlined_call_operand.vmem [shape: bf16[1728,128], index: 1, kind: input, shape index: {}]   ;;  %s3086_s0 = inlined_call_operand.vmem [shape: f32[2,32,128], index: 0, kind: input, shape index: {}]   ;;  %s3087_s2 = inlined_call_operand.vmem [shape: f32[19,128], index: 2, kind: input, shape index: {}]   ;;  %s3088_s3 = inlined_call_operand.vmem [shape: f32[32,128], index: 3, kind: output, shape index: {}]  }
   0x1   :  { %v2318_v0 = vld [vmem:[%s3085_s1 + $0x38] sm:$0xff]  ;;  %v2317_v3 = vld [vmem:[%s3085_s1 + $0x30] sm:$0xff]  ;;  %v2316_v6 = vld [vmem:[%s3085_s1 + $0x28] sm:$0xff]  ;;  %vm496_vm7 = vcmask 261120   ;;  %vm600_vm14 = vcmask 785408   ;;  %s2472_s13 = smov 16  }
   0x2   :  { %v2326_v1 = vld [vmem:[%s3085_s1 + $0x78] sm:$0xff]  ;;  %257 = vmatpush.bf16.msra.mxu0 %v2318_v0  ;;  %v2325_v4 = vld [vmem:[%s3085_s1 + $0x70] sm:$0xff]  ;;  %v2324_v7 = vld [vmem:[%s3085_s1 + $0x68] sm:$0xff]  ;;  %v2529_v13 = vshrl.u32 %v24_v9, 7 }
   0x3   :  { %v2334_v2 = vld [vmem:[%s3085_s1 + $0xb8] sm:$0xff]  ;;  %271 = vmatpush.bf16.msra.mxu1 %v2326_v1  ;;  %v2333_v5 = vld [vmem:[%s3085_s1 + $0xb0] sm:$0xff]  ;;  %v2332_v8 = vld [vmem:[%s3085_s1 + $0xa8] sm:$0xff] }
   0x4   :  { %285 = vmatpush.bf16.msra.mxu2 %v2334_v2  ;;  %v2315_v10 = vld [vmem:[%s3085_s1 + $0x20] sm:$0xff]  ;;  %v18_v14 = vld [vmem:[%s3086_s0 + $0x18] sm:$0xff]  ;;  %v17_v18 = vld [vmem:[%s3086_s0 + $0x10] sm:$0xff]  ;;  %v30_v20 = vand.u32 1, %v2529_v13 }
   0x5   :  { %v2323_v11 = vld [vmem:[%s3085_s1 + $0x60] sm:$0xff]  ;;  %v2314_v15 = vld [vmem:[%s3085_s1 + $0x18] sm:$0xff]  ;;  %v20_v19 = vrot.slane %v18_v14, 3  ;;  %v2313_v21 = vld [vmem:[%s3085_s1 + $0x10] sm:$0xff]  ;;  %v49_v24 = vrot.slane %v17_v18, 4  ;;  %v50_v32 = vrot.slane %v18_v14, 4 }
   0x6   :  { %258 = vmatpush.bf16.msra.mxu0 %v2317_v3  ;;  %v2331_v12 = vld [vmem:[%s3085_s1 + $0xa0] sm:$0xff]  ;;  %v2322_v16 = vld [vmem:[%s3085_s1 + $0x58] sm:$0xff]  ;;  %v2321_v22 = vld [vmem:[%s3085_s1 + $0x50] sm:$0xff]  ;;  %vm2565_vm1 = vcmp.eq.s32.totalorder %v30_v20, 0 }
   0x7   :  { %272 = vmatpush.bf16.msra.mxu1 %v2325_v4  ;;  %v2330_v17 = vld [vmem:[%s3085_s1 + $0x98] sm:$0xff]  ;;  %v16_v23 = vld [vmem:[%s3086_s0 + $0x8] sm:$0xff]  ;;  %v2329_v25 = vld [vmem:[%s3085_s1 + $0x90] sm:$0xff]  ;;  %v23_v27 = vsel %vm22_vm0, 0.0, %v20_v19  ;;  %v52_v33 = vrot.slane %v49_v24, 4  ;;  %v61_v45 = vsel %vm55_vm2, %v49_v24, %v18_v14 }
   0x8   :  { %286 = vmatpush.bf16.msra.mxu2 %v2333_v5  ;;  %v15_v26 = vld [vmem:[%s3086_s0] sm:$0xff]  ;;  %v46_v29 = vrot.slane %v16_v23, 4  ;;  %v2312_v30 = vld [vmem:[%s3085_s1 + $0x8] sm:$0xff]  ;;  %v41_v35 = vsel %vm2565_vm1, 0.0, %v23_v27  ;;  %v2341_v27 = vld [vmem:[%s3085_s1 + $0xf0] sm:$0xff] }
   0x9   :  { %v2320_v31 = vld [vmem:[%s3085_s1 + $0x48] sm:$0xff]  ;;  %v43_v36 = vrot.slane %v15_v26, 4  ;;  %v2311_v38 = vld [vmem:[%s3085_s1] sm:$0xff]  ;;  %v56_v40 = vsel %vm55_vm2, %v41_v35, %v15_v26  ;;  %v60_v42 = vsel %vm55_vm2, %v52_v33, %v50_v32 }
   0xa   :  { %259 = vmatpush.bf16.msra.mxu0 %v2316_v6  ;;  %v2328_v34 = vld [vmem:[%s3085_s1 + $0x88] sm:$0xff]  ;;  %v59_v37 = vsel %vm55_vm2, %v46_v29, %v17_v18  ;;  %v2319_v39 = vld [vmem:[%s3085_s1 + $0x40] sm:$0xff]  ;;  %v57_v41 = vsel %vm55_vm2, %v15_v26, %v46_v29  ;;  %v2345_v18 = vld [vmem:[%s3085_s1 + $0x110] sm:$0xff] }
   0xb   :  { %273 = vmatpush.bf16.msra.mxu1 %v2324_v7  ;;  %v2327_v43 = vld [vmem:[%s3085_s1 + $0x80] sm:$0xff]  ;;  %v58_v44 = vsel %vm55_vm2, %v43_v36, %v16_v23  ;;  %v62_v46 = vpack.c.bf16 %v59_v37, %v56_v40  ;;  %v63_v47 = vpack.c.bf16 %v60_v42, %v57_v41  ;;  %v2342_v26 = vld [vmem:[%s3085_s1 + $0xf8] sm:$0xff]  ;;  %v2360_v29 = vld [vmem:[%s3085_s1 + $0x188] sm:$0xff] }
   0xc   :  { %287 = vmatpush.bf16.msra.mxu2 %v2332_v8  ;;  %v64_v48 = vpack.c.bf16 %v61_v45, %v58_v44  ;;  %v2343_v24 = vld [vmem:[%s3085_s1 + $0x100] sm:$0xff]  ;;  %470 = vmatpush.bf16.msra.mxu3 %v2342_v26  ;;  %v2376_v33 = vld [vmem:[%s3085_s1 + $0x208] sm:$0xff]  ;;  %v2374_v41 = vld [vmem:[%s3085_s1 + $0x1f8] sm:$0xff] }
   0xd   :  { %v2359_v32 = vld [vmem:[%s3085_s1 + $0x180] sm:$0xff]  ;;  %v2340_v35 = vld [vmem:[%s3085_s1 + $0xe8] sm:$0xff]  ;;  %v2357_v44 = vld [vmem:[%s3085_s1 + $0x170] sm:$0xff] }
   0xe   :  { %260 = vmatpush.bf16.msra.mxu0 %v2315_v10  ;;  %v2375_v36 = vld [vmem:[%s3085_s1 + $0x200] sm:$0xff] }
   0xf   :  { %274 = vmatpush.bf16.msra.mxu1 %v2323_v11  ;;  %v2339_v40 = vld [vmem:[%s3085_s1 + $0xe0] sm:$0xff] }
  0x10   :  { %288 = vmatpush.bf16.msra.mxu2 %v2331_v12  ;;  %471 = vmatpush.bf16.msra.mxu3 %v2341_v27  ;;  %v326_v42 = vld [vmem:[%s3087_s2] sm:$0x1]  ;;  %v2362_v27 = vld [vmem:[%s3085_s1 + $0x198] sm:$0xff] }
  0x12   :  { %261 = vmatpush.bf16.msra.mxu0 %v2314_v15  ;;  %v2346_v15 = vld [vmem:[%s3085_s1 + $0x118] sm:$0xff] }
  0x13   :  { %275 = vmatpush.bf16.msra.mxu1 %v2322_v16 }
  0x14   :  { %289 = vmatpush.bf16.msra.mxu2 %v2330_v17  ;;  %472 = vmatpush.bf16.msra.mxu3 %v2340_v35 }
  0x16   :  { %262 = vmatpush.bf16.msra.mxu0 %v2313_v21 }
  0x17   :  { %276 = vmatpush.bf16.msra.mxu1 %v2321_v22  ;;  %v2344_v22 = vld [vmem:[%s3085_s1 + $0x108] sm:$0xff] }
  0x18   :  { %290 = vmatpush.bf16.msra.mxu2 %v2329_v25  ;;  %473 = vmatpush.bf16.msra.mxu3 %v2339_v40 }
  0x1a   :  { %263 = vmatpush.bf16.msra.mxu0 %v2312_v30 }
  0x1b   :  { %277 = vmatpush.bf16.msra.mxu1 %v2320_v31 }
  0x1c   :  { %291 = vmatpush.bf16.msra.mxu2 %v2328_v34 }
  0x1e   :  { %264 = vmatpush.bf16.msra.mxu0 %v2311_v38  ;;  %v2358_v38 = vld [vmem:[%s3085_s1 + $0x178] sm:$0xff] }
  0x1f   :  { %278 = vmatpush.bf16.msra.mxu1 %v2319_v39 }
  0x20   :  { %292 = vmatpush.bf16.msra.mxu2 %v2327_v43 }
  0x21   :  { %265 = vmatmul.bf16.vlgmr.msra.gmra.mxu0 %v62_v46  ;;  %v2338_v46 = vld [vmem:[%s3085_s1 + $0xd8] sm:$0xff] }
  0x22   :  { %279 = vmatmul.bf16.vlgmr.msra.gmra.mxu1 %v63_v47  ;;  %487 = vmatpush.bf16.msrb.mxu0 %v2346_v15  ;;  %v2036_v15 = vld [vmem:[%s3086_s0 + $0x28] sm:$0xff] }
  0x23   :  { %293 = vmatmul.bf16.vlgmr.msra.gmra.mxu2 %v64_v48  ;;  %v2356_v48 = vld [vmem:[%s3085_s1 + $0x168] sm:$0xff]  ;;  %474 = vmatpush.bf16.msra.mxu3 %v2338_v46 }
  0x24   :  { %882 = vmatpush.bf16.msrb.mxu2 %v2360_v29 }
  0x26   :  { %488 = vmatpush.bf16.msrb.mxu0 %v2345_v18  ;;  %v2371_v18 = vld [vmem:[%s3085_s1 + $0x1e0] sm:$0xff] }
  0x28   :  { %883 = vmatpush.bf16.msrb.mxu2 %v2359_v32 }
  0x2a   :  { %489 = vmatpush.bf16.msrb.mxu0 %v2344_v22  ;;  %v2035_v22 = vld [vmem:[%s3086_s0 + $0x20] sm:$0xff] }
  0x2c   :  { %884 = vmatpush.bf16.msrb.mxu2 %v2358_v38 }
  0x2e   :  { %490 = vmatpush.bf16.msrb.mxu0 %v2343_v24 }
  0x30   :  { %885 = vmatpush.bf16.msrb.mxu2 %v2357_v44 }
  0x32   :  { %910 = vmatpush.bf16.msra.mxu0 %v2376_v33  ;;  %v2361_v33 = vld [vmem:[%s3085_s1 + $0x190] sm:$0xff] }
  0x34   :  { %886 = vmatpush.bf16.msrb.mxu2 %v2356_v48 }
  0x36   :  { %911 = vmatpush.bf16.msra.mxu0 %v2375_v36 }
  0x3a   :  { %912 = vmatpush.bf16.msra.mxu0 %v2374_v41 }
  0x9e   :  { %v266_v49 = vpop.f32.mrf.mxu0 }
  0x9f   :  { %v280_v50 = vpop.f32.mrf.mxu1 }
  0xa0   :  { %v281_v52 = vadd.f32 %v280_v50, %v266_v49  ;;  %v2442_v50 = vld [vmem:[%s3087_s2 + $0x1] ss:$0 sm:$0xff] }
  0xa6   :  { %v294_v51 = vpop.f32.mrf.mxu2  ;;  %v268_v53 = vpop.f32.mrf.mxu0 }
  0xa7   :  { %v282_v54 = vpop.f32.mrf.mxu1  ;;  %v295_v55 = vadd.f32 %v294_v51, %v281_v52  ;;  %v2337_v51 = vld [vmem:[%s3085_s1 + $0xd0] sm:$0xff] }
  0xa8   :  { %v283_v56 = vadd.f32 %v282_v54, %v268_v53  ;;  %475 = vmatpush.bf16.msra.mxu3 %v2337_v51 }
  0xa9   :  { %v300_v59 = vsel %vm299_vm3, %v295_v55, 0.0 }
  0xae   :  { %v296_v57 = vpop.f32.mrf.mxu2 }
  0xaf   :  { %v297_v58 = vadd.f32 %v296_v57, %v283_v56  ;;  %v2336_v56 = vld [vmem:[%s3085_s1 + $0xc8] sm:$0xff] }
  0xb0   :  { %476 = vmatpush.bf16.msra.mxu3 %v2336_v56 }
  0xb1   :  { %v301_v60 = vsel %vm299_vm3, %v297_v58, 0.0 }
  0xb2   :  { %v302_v61 = vadd.f32 %v301_v60, %v300_v59 }
  0xb4   :  { %v303_v62 = vrot.slane %v302_v61, 4 }
  0xb6   :  { %v304_v63 = vadd.f32 %v303_v62, %v302_v61  ;;  %v2335_v61 = vld [vmem:[%s3085_s1 + $0xc0] sm:$0xff] }
  0xb7   :  { %477 = vmatpush.bf16.msra.mxu3 %v2335_v61 }
  0xb8   :  { %v305_v0 = vrot.slane %v304_v63, 2 }
  0xba   :  { %v306_v1 = vadd.f32 %v305_v0, %v304_v63  ;;  %v2368_v0 = vld [vmem:[%s3085_s1 + $0x1c8] sm:$0xff] }
  0xbb   :  { %896 = vmatpush.bf16.msrb.mxu3 %v2368_v0 }
  0xbc   :  { %v307_v2 = vrot.slane %v306_v1, 1 }
  0xbe   :  { %v308_v3 = vadd.f32 %v307_v2, %v306_v1 }
  0xc0   :  { %v310_v4 = vmul.f32 0.0625, %v308_v3 }
  0xc2   :  { %v2597_v5 = vsub.f32 %v295_v55, %v310_v4  ;;  %v2599_v6 = vsub.f32 %v297_v58, %v310_v4  ;;  %v2367_v4 = vld [vmem:[%s3085_s1 + $0x1c0] sm:$0xff] }
  0xc3   :  { %897 = vmatpush.bf16.msrb.mxu3 %v2367_v4 }
  0xc4   :  { %v313_v7 = vmul.f32 %v2597_v5, %v2597_v5  ;;  %v314_v8 = vmul.f32 %v2599_v6, %v2599_v6 }
  0xc6   :  { %v315_v9 = vsel %vm299_vm3, %v313_v7, 0.0  ;;  %v316_v10 = vsel %vm299_vm3, %v314_v8, 0.0  ;;  %v2365_v7 = vld [vmem:[%s3085_s1 + $0x1b0] sm:$0xff] }
  0xc7   :  { %v317_v11 = vadd.f32 %v316_v10, %v315_v9  ;;  %v2373_v8 = vld [vmem:[%s3085_s1 + $0x1f0] sm:$0xff]  ;;  %v2354_v9 = vld [vmem:[%s3085_s1 + $0x158] sm:$0xff]  ;;  %v2364_v10 = vld [vmem:[%s3085_s1 + $0x1a8] sm:$0xff] }
  0xc8   :  { %913 = vmatpush.bf16.msra.mxu0 %v2373_v8 }
  0xc9   :  { %v318_v12 = vrot.slane %v317_v11, 4 }
  0xcb   :  { %v319_v14 = vadd.f32 %v318_v12, %v317_v11  ;;  %v2372_v11 = vld [vmem:[%s3085_s1 + $0x1e8] sm:$0xff]  ;;  %v2038_v12 = vld [vmem:[%s3086_s0 + $0x38] sm:$0xff] }
  0xcc   :  { %914 = vmatpush.bf16.msra.mxu0 %v2372_v11 }
  0xcd   :  { %v320_v16 = vrot.slane %v319_v14, 2 }
  0xcf   :  { %v321_v17 = vadd.f32 %v320_v16, %v319_v14  ;;  %v664_v14 = vrot.slane %v2038_v12, 3  ;;  %v2353_v16 = vld [vmem:[%s3085_s1 + $0x150] sm:$0xff] }
  0xd0   :  { %915 = vmatpush.bf16.msra.mxu0 %v2371_v18 }
  0xd1   :  { %v322_v19 = vrot.slane %v321_v17, 1 }
  0xd3   :  { %v323_v21 = vadd.f32 %v322_v19, %v321_v17  ;;  %v2363_v17 = vld [vmem:[%s3085_s1 + $0x1a0] sm:$0xff]  ;;  %v666_v19 = vsel %vm22_vm0, 0.0, %v664_v14 }
  0xd4   :  { %v667_v24 = vsel %vm2565_vm1, 0.0, %v666_v19 }
  0xd5   :  { %v325_v23 = vmul.f32 0.0625, %v323_v21  ;;  %v672_v21 = vrot.slane %v2036_v15, 4 }
  0xd7   :  { %v327_v25 = vadd.f32 1e-05, %v325_v23  ;;  %v2037_v23 = vld [vmem:[%s3086_s0 + $0x30] sm:$0xff]  ;;  %v682_v51 = vsel %vm55_vm2, %v2035_v22, %v672_v21 }
  0xd8   :  { %v684_v26 = vsel %vm55_vm2, %v672_v21, %v2037_v23  ;;  %v675_v32 = vrot.slane %v2037_v23, 4 }
  0xd9   :  { %2452 = vrsqrt.f32 %v327_v25  ;;  %vm334_vm5 = vweird.f32 %v327_v25 }
  0xda   :  { %v686_v36 = vsel %vm55_vm2, %v675_v32, %v2038_v12 }
  0xdf   :  { %v2453_v30 = vpop.eup %2452 }
  0xe0   :  { %v329_v31 = vmul.f32 %v2453_v30, %v327_v25  ;;  %vm335_vm4 = vweird.f32 %v2453_v30  ;;  %v681_v25 = vsel %vm55_vm2, %v667_v24, %v2035_v22 }
  0xe1   :  { %vm336_vm6 = vmor %vm334_vm5, %vm335_vm4  ;;  %v687_v29 = vpack.c.bf16 %v684_v26, %v681_v25 }
  0xe2   :  { %v330_v34 = vmul.f32 %v2453_v30, %v329_v31  ;;  %v669_v31 = vrot.slane %v2035_v22, 4 }
  0xe4   :  { %v331_v37 = vmul.f32 0.5, %v330_v34  ;;  %v2369_v34 = vld [vmem:[%s3085_s1 + $0x1d0] sm:$0xff]  ;;  %v683_v35 = vsel %vm55_vm2, %v669_v31, %v2036_v15 }
  0xe6   :  { %v332_v39 = vsub.f32 1.5, %v331_v37  ;;  %v689_v37 = vpack.c.bf16 %v686_v36, %v683_v35 }
  0xe8   :  { %v333_v43 = vmul.f32 %v2453_v30, %v332_v39 }
  0xea   :  { %v337_v45 = vsel %vm336_vm6, %v2453_v30, %v333_v43  ;;  %v2370_v30 = vld [vmem:[%s3085_s1 + $0x1d8] sm:$0xff]  ;;  %vm617_vm6 = vcmask 125952  }
  0xeb   :  { %v338_v47 = vmul.f32 %v337_v45, %v326_v42  ;;  %916 = vmatpush.bf16.msra.mxu0 %v2370_v30 }
  0xed   :  { %v340_v49 = vperm.slane %v338_v47, 0 }
  0xef   :  { %v341_v52 = vmul.f32 %v340_v49, %v2597_v5  ;;  %v342_v53 = vmul.f32 %v340_v49, %v2599_v6  ;;  %v2366_v5 = vld [vmem:[%s3085_s1 + $0x1b8] sm:$0xff]  ;;  %v2355_v6 = vld [vmem:[%s3085_s1 + $0x160] sm:$0xff]  ;;  %917 = vmatpush.bf16.msra.mxu0 %v2369_v34  ;;  %v676_v49 = vrot.slane %v2038_v12, 4 }
  0xf0   :  { %898 = vmatpush.bf16.msrb.mxu3 %v2366_v5  ;;  %887 = vmatpush.bf16.msrb.mxu2 %v2355_v6 }
  0xf1   :  { %v345_v54 = vadd.f32 %v2442_v50, %v342_v53  ;;  %v344_v55 = vadd.f32 %v2442_v50, %v341_v52  ;;  %v678_v50 = vrot.slane %v675_v32, 4 }
  0xf3   :  { %v347_v57 = vmul.f32 0.01, %v345_v54  ;;  %v346_v58 = vmul.f32 0.01, %v344_v55  ;;  %v685_v52 = vsel %vm55_vm2, %v678_v50, %v676_v49  ;;  %v517_v49 = vld [vmem:[%s3087_s2 + $0x2] sm:$0x1] }
  0xf4   :  { %899 = vmatpush.bf16.msrb.mxu3 %v2365_v7  ;;  %888 = vmatpush.bf16.msrb.mxu2 %v2354_v9  ;;  %v688_v53 = vpack.c.bf16 %v685_v52, %v682_v51  ;;  %v2388_v52 = vld [vmem:[%s3085_s1 + $0x268] sm:$0xff] }
  0xf5   :  { %v2672_v59 = vmax.f32 %v344_v55, %v346_v58  ;;  %v2674_v60 = vmax.f32 %v345_v54, %v347_v57 }
  0xf7   :  { %v362_v62 = vrot.slane %v2674_v60, 4  ;;  %v359_v63 = vrot.slane %v2672_v59, 4  ;;  %v351_v38 = vrot.slane %v2674_v60, 3 }
  0xf8   :  { %900 = vmatpush.bf16.msrb.mxu3 %v2364_v10  ;;  %889 = vmatpush.bf16.msrb.mxu2 %v2353_v16 }
  0xf9   :  { %v2422_v1 = vpack.i.bf16 %v362_v62, %v2672_v59  ;;  %v368_v2 = vsel %vm55_vm2, %v359_v63, %v2674_v60  ;;  %v353_v39 = vsel %vm22_vm0, 0.0, %v351_v38 }
  0xfa   :  { %v370_v3 = vpack.c.bf16 %v368_v2, %v368_v2  ;;  %v354_v43 = vsel %vm2565_vm1, 0.0, %v353_v39 }
  0xfb   :  { %2423 = vrot.lane.b32.xlu0 %v2422_v1, %s2470_s6  ;;  %890 = vmatmul.bf16.vlgmr.msrb.gmra.mxu2 %v687_v29 }
  0xfc   :  { %2009 = vmatmul.msk.bf16.vlgmr.msrb.gmra.mxu0 %vm299_vm3, %v370_v3  ;;  %901 = vmatpush.bf16.msrb.mxu3 %v2363_v17 }
  0xfd   :  { %1111 = vmatpush.bf16.msra.mxu2 %v2388_v52 }
 0x100   :  { %902 = vmatpush.bf16.msrb.mxu3 %v2362_v27 }
 0x104   :  { %903 = vmatpush.bf16.msrb.mxu3 %v2361_v33 }
 0x10c   :  { %918 = vmatmul.bf16.vlgmr.msra.gmra.mxu0 %v689_v37 }
 0x16d   :  { %v2424_v40 = vpop.permute.xlu0 %2423 }
 0x16e   :  { %v2426_v41 = vunpack.i.h.bf16 %v2424_v40  ;;  %v2425_v42 = vunpack.i.l.bf16 %v2424_v40 }
 0x170   :  { %v361_v44 = vsel %vm299_vm3, %v354_v43, %v2425_v42  ;;  %v366_v45 = vsel %vm299_vm3, %v2672_v59, %v2426_v41 }
 0x171   :  { %v367_v46 = vsel %vm55_vm2, %v361_v44, %v366_v45 }
 0x172   :  { %v369_v47 = vpack.c.bf16 %v367_v46, %v367_v46 }
 0x174   :  { %478 = vmatmul.bf16.vlgmr.msra.gmra.mxu3 %v369_v47 }
 0x179   :  { %v492_v48 = vpop.f32.mrf.mxu0 }
 0x17e   :  { %v891_v1 = vpop.f32.mrf.mxu2 }
 0x181   :  { %v494_v54 = vpop.f32.mrf.mxu0 }
 0x184   :  { %904 = vmatmul.bf16.vlgmr.msrb.gmra.mxu3 %v688_v53 }
 0x186   :  { %v893_v10 = vpop.f32.mrf.mxu2 }
 0x189   :  { %v919_v3 = vpop.f32.mrf.mxu0 }
 0x191   :  { %v921_v16 = vpop.f32.mrf.mxu0 }
 0x1f7   :  { %v479_v55 = vpop.f32.mrf.mxu3 }
 0x1f8   :  { %v493_v56 = vadd.f32 %v492_v48, %v479_v55 }
 0x1fa   :  { %v497_v57 = vsel %vm496_vm7, %v493_v56, 0.0 }
 0x1fb   :  { %v498_v58 = vrot.slane %v497_v57, 4 }
 0x1fd   :  { %v499_v59 = vadd.f32 %v498_v58, %v497_v57  ;;  %v2444_v58 = vld [vmem:[%s3087_s2 + $0x3] ss:$0 sm:$0xff] }
 0x1ff   :  { %v500_v60 = vrot.slane %v499_v59, 2  ;;  %v481_v61 = vpop.f32.mrf.mxu3 }
 0x201   :  { %v501_v62 = vadd.f32 %v500_v60, %v499_v59  ;;  %v2387_v59 = vld [vmem:[%s3085_s1 + $0x260] sm:$0xff] }
 0x202   :  { %1112 = vmatpush.bf16.msra.mxu2 %v2387_v59 }
 0x203   :  { %v502_v63 = vrot.slane %v501_v62, 1 }
 0x205   :  { %v503_v0 = vadd.f32 %v502_v63, %v501_v62 }
 0x207   :  { %v505_v2 = vmul.f32 0.125, %v503_v0  ;;  %v905_v4 = vpop.f32.mrf.mxu3  ;;  %v2386_v0 = vld [vmem:[%s3085_s1 + $0x258] sm:$0xff] }
 0x208   :  { %v906_v7 = vadd.f32 %v905_v4, %v891_v1  ;;  %1113 = vmatpush.bf16.msra.mxu2 %v2386_v0 }
 0x209   :  { %v506_v5 = vsub.f32 %v493_v56, %v505_v2 }
 0x20a   :  { %v920_v14 = vadd.f32 %v919_v3, %v906_v7  ;;  %v2385_v3 = vld [vmem:[%s3085_s1 + $0x250] sm:$0xff]  ;;  %v2352_v7 = vld [vmem:[%s3085_s1 + $0x148] sm:$0xff] }
 0x20b   :  { %v507_v6 = vmul.f32 %v506_v5, %v506_v5  ;;  %606 = vmatpush.bf16.msrb.mxu1 %v2352_v7 }
 0x20c   :  { %v924_v21 = vsel %vm299_vm3, %v920_v14, 0.0  ;;  %1114 = vmatpush.bf16.msra.mxu2 %v2385_v3 }
 0x20d   :  { %v508_v8 = vsel %vm496_vm7, %v507_v6, 0.0 }
 0x20e   :  { %v509_v9 = vrot.slane %v508_v8, 4 }
 0x20f   :  { %v907_v11 = vpop.f32.mrf.mxu3 }
 0x210   :  { %v510_v12 = vadd.f32 %v509_v9, %v508_v8  ;;  %v908_v15 = vadd.f32 %v907_v11, %v893_v10  ;;  %v2351_v8 = vld [vmem:[%s3085_s1 + $0x140] sm:$0xff] }
 0x211   :  { %607 = vmatpush.bf16.msrb.mxu1 %v2351_v8 }
 0x212   :  { %v511_v17 = vrot.slane %v510_v12, 2  ;;  %v922_v18 = vadd.f32 %v921_v16, %v908_v15  ;;  %v2349_v16 = vld [vmem:[%s3085_s1 + $0x130] sm:$0xff] }
 0x214   :  { %v512_v19 = vadd.f32 %v511_v17, %v510_v12  ;;  %v925_v22 = vsel %vm299_vm3, %v922_v18, 0.0  ;;  %v2350_v12 = vld [vmem:[%s3085_s1 + $0x138] sm:$0xff]  ;;  %v950_v17 = vld [vmem:[%s3087_s2 + $0x6] sm:$0x1] }
 0x215   :  { %v926_v23 = vadd.f32 %v925_v22, %v924_v21  ;;  %608 = vmatpush.bf16.msrb.mxu1 %v2350_v12  ;;  %v2348_v21 = vld [vmem:[%s3085_s1 + $0x128] sm:$0xff] }
 0x216   :  { %v513_v24 = vrot.slane %v512_v19, 1 }
 0x217   :  { %v927_v25 = vrot.slane %v926_v23, 4 }
 0x218   :  { %v514_v26 = vadd.f32 %v513_v24, %v512_v19  ;;  %v2443_v24 = vld [vmem:[%s3087_s2 + $0x7] ss:$0 sm:$0xff] }
 0x219   :  { %v928_v27 = vadd.f32 %v927_v25, %v926_v23  ;;  %609 = vmatpush.bf16.msrb.mxu1 %v2349_v16 }
 0x21a   :  { %v516_v29 = vmul.f32 0.125, %v514_v26 }
 0x21b   :  { %v929_v30 = vrot.slane %v928_v27, 2 }
 0x21c   :  { %v518_v31 = vadd.f32 1e-05, %v516_v29 }
 0x21d   :  { %v930_v32 = vadd.f32 %v929_v30, %v928_v27  ;;  %610 = vmatpush.bf16.msrb.mxu1 %v2348_v21 }
 0x21e   :  { %2454 = vrsqrt.f32 %v518_v31  ;;  %vm525_vm9 = vweird.f32 %v518_v31 }
 0x21f   :  { %v931_v33 = vrot.slane %v930_v32, 1 }
 0x221   :  { %v932_v34 = vadd.f32 %v931_v33, %v930_v32 }
 0x223   :  { %v934_v35 = vmul.f32 0.0625, %v932_v34 }
 0x224   :  { %v2455_v36 = vpop.eup %2454 }
 0x225   :  { %v520_v37 = vmul.f32 %v2455_v36, %v518_v31  ;;  %v2767_v38 = vsub.f32 %v920_v14, %v934_v35  ;;  %v2769_v39 = vsub.f32 %v922_v18, %v934_v35  ;;  %vm526_vm8 = vweird.f32 %v2455_v36 }
 0x226   :  { %vm527_vm10 = vmor %vm525_vm9, %vm526_vm8 }
 0x227   :  { %v521_v40 = vmul.f32 %v2455_v36, %v520_v37  ;;  %v937_v41 = vmul.f32 %v2767_v38, %v2767_v38  ;;  %v938_v42 = vmul.f32 %v2769_v39, %v2769_v39 }
 0x229   :  { %v522_v43 = vmul.f32 0.5, %v521_v40  ;;  %v939_v44 = vsel %vm299_vm3, %v937_v41, 0.0  ;;  %v940_v45 = vsel %vm299_vm3, %v938_v42, 0.0  ;;  %v2383_v41 = vld [vmem:[%s3085_s1 + $0x240] sm:$0xff]  ;;  %v2382_v42 = vld [vmem:[%s3085_s1 + $0x238] sm:$0xff] }
 0x22a   :  { %v941_v46 = vadd.f32 %v940_v45, %v939_v44  ;;  %v2380_v44 = vld [vmem:[%s3085_s1 + $0x228] sm:$0xff]  ;;  %v2379_v45 = vld [vmem:[%s3085_s1 + $0x220] sm:$0xff] }
 0x22b   :  { %v523_v47 = vsub.f32 1.5, %v522_v43  ;;  %v2381_v43 = vld [vmem:[%s3085_s1 + $0x230] sm:$0xff] }
 0x22c   :  { %v942_v48 = vrot.slane %v941_v46, 4 }
 0x22d   :  { %v524_v50 = vmul.f32 %v2455_v36, %v523_v47  ;;  %v2378_v47 = vld [vmem:[%s3085_s1 + $0x218] sm:$0xff] }
 0x22e   :  { %v943_v51 = vadd.f32 %v942_v48, %v941_v46 }
 0x22f   :  { %v528_v53 = vsel %vm527_vm10, %v2455_v36, %v524_v50 }
 0x230   :  { %v529_v54 = vmul.f32 %v528_v53, %v517_v49  ;;  %v944_v55 = vrot.slane %v943_v51, 2 }
 0x232   :  { %v531_v56 = vperm.slane %v529_v54, 0  ;;  %v945_v57 = vadd.f32 %v944_v55, %v943_v51  ;;  %v2377_v55 = vld [vmem:[%s3085_s1 + $0x210] sm:$0xff] }
 0x234   :  { %v532_v60 = vmul.f32 %v531_v56, %v506_v5  ;;  %v946_v61 = vrot.slane %v945_v57, 1 }
 0x236   :  { %v947_v62 = vadd.f32 %v946_v61, %v945_v57  ;;  %v534_v63 = vadd.f32 %v2444_v58, %v532_v60 }
 0x238   :  { %v949_v1 = vmul.f32 0.0625, %v947_v62  ;;  %v535_v2 = vmul.f32 0.01, %v534_v63 }
 0x23a   :  { %v951_v4 = vadd.f32 1e-05, %v949_v1  ;;  %v2795_v6 = vmax.f32 %v534_v63, %v535_v2 }
 0x23c   :  { %2456 = vrsqrt.f32 %v951_v4  ;;  %542 = vrot.lane.b32.xlu0 %v2795_v6, %s2471_s30  ;;  %v545_v5 = vrot.slane %v2795_v6, 4  ;;  %vm958_vm12 = vweird.f32 %v951_v4  ;;  %v538_v46 = vrot.slane %v2795_v6, 3 }
 0x23e   :  { %546 = vrot.lane.b32.xlu1 %v545_v5, %s2470_s6  ;;  %v540_v48 = vsel %vm22_vm0, 0.0, %v538_v46 }
 0x23f   :  { %v541_v50 = vsel %vm2565_vm1, 0.0, %v540_v48 }
 0x242   :  { %v2457_v9 = vpop.eup %2456 }
 0x243   :  { %v953_v10 = vmul.f32 %v2457_v9, %v951_v4  ;;  %vm959_vm11 = vweird.f32 %v2457_v9 }
 0x244   :  { %vm960_vm13 = vmor %vm958_vm12, %vm959_vm11 }
 0x245   :  { %v954_v11 = vmul.f32 %v2457_v9, %v953_v10 }
 0x247   :  { %v955_v14 = vmul.f32 0.5, %v954_v11 }
 0x249   :  { %v956_v15 = vsub.f32 1.5, %v955_v14 }
 0x24b   :  { %v957_v18 = vmul.f32 %v2457_v9, %v956_v15 }
 0x24d   :  { %v961_v19 = vsel %vm960_vm13, %v2457_v9, %v957_v18 }
 0x24e   :  { %v962_v22 = vmul.f32 %v961_v19, %v950_v17 }
 0x250   :  { %v964_v23 = vperm.slane %v962_v22, 0 }
 0x252   :  { %v965_v25 = vmul.f32 %v964_v23, %v2767_v38  ;;  %v966_v26 = vmul.f32 %v964_v23, %v2769_v39  ;;  %v2347_v38 = vld [vmem:[%s3085_s1 + $0x120] sm:$0xff]  ;;  %v2384_v39 = vld [vmem:[%s3085_s1 + $0x248] sm:$0xff] }
 0x253   :  { %611 = vmatpush.bf16.msrb.mxu1 %v2347_v38  ;;  %v1140_v38 = vld [vmem:[%s3087_s2 + $0x8] sm:$0x1] }
 0x254   :  { %v969_v27 = vadd.f32 %v2443_v24, %v966_v26  ;;  %v968_v29 = vadd.f32 %v2443_v24, %v965_v25 }
 0x256   :  { %v971_v30 = vmul.f32 0.01, %v969_v27  ;;  %v970_v31 = vmul.f32 0.01, %v968_v29 }
 0x257   :  { %1094 = vmatpush.bf16.msra.mxu1 %v2384_v39 }
 0x258   :  { %v972_v32 = vmax.f32 %v968_v29, %v970_v31  ;;  %v973_v33 = vmax.f32 %v969_v27, %v971_v30 }
 0x25a   :  { %v986_v34 = vrot.slane %v973_v33, 4  ;;  %v983_v35 = vrot.slane %v972_v32, 4  ;;  %v975_v56 = vrot.slane %v973_v33, 3 }
 0x25b   :  { %1095 = vmatpush.bf16.msra.mxu1 %v2383_v41 }
 0x25c   :  { %v2427_v36 = vpack.i.bf16 %v986_v34, %v972_v32  ;;  %v992_v37 = vsel %vm55_vm2, %v983_v35, %v973_v33  ;;  %v977_v57 = vsel %vm22_vm0, 0.0, %v975_v56  ;;  %v2393_v34 = vld [vmem:[%s3085_s1 + $0x290] sm:$0xff] }
 0x25d   :  { %v994_v40 = vpack.c.bf16 %v992_v37, %v992_v37  ;;  %v978_v61 = vsel %vm2565_vm1, 0.0, %v977_v57  ;;  %v2392_v37 = vld [vmem:[%s3085_s1 + $0x288] sm:$0xff] }
 0x25e   :  { %2428 = vrot.lane.b32.xlu1 %v2427_v36, %s2470_s6 }
 0x25f   :  { %2183 = vmatmul.msk.bf16.vlgmr.msra.gmra.mxu2 %vm299_vm3, %v994_v40  ;;  %1096 = vmatpush.bf16.msra.mxu1 %v2382_v42 }
 0x263   :  { %1097 = vmatpush.bf16.msra.mxu1 %v2381_v43 }
 0x267   :  { %1098 = vmatpush.bf16.msra.mxu1 %v2380_v44  ;;  %v2446_v44 = vld [vmem:[%s3087_s2 + $0x9] ss:$0 sm:$0xff] }
 0x26b   :  { %1099 = vmatpush.bf16.msra.mxu1 %v2379_v45 }
 0x26f   :  { %1100 = vmatpush.bf16.msra.mxu1 %v2378_v47 }
 0x273   :  { %1101 = vmatpush.bf16.msra.mxu1 %v2377_v55 }
 0x2ae   :  { %v543_v49 = vpop.permute.xlu0 %542 }
 0x2af   :  { %v549_v51 = vsel %vm496_vm7, %v541_v50, %v543_v49  ;;  %v2391_v50 = vld [vmem:[%s3085_s1 + $0x280] sm:$0xff] }
 0x2b0   :  { %v547_v52 = vpop.permute.xlu1 %546 }
 0x2b1   :  { %v550_v53 = vsel %vm299_vm3, %v549_v51, %v547_v52  ;;  %v2390_v51 = vld [vmem:[%s3085_s1 + $0x278] sm:$0xff]  ;;  %v2389_v52 = vld [vmem:[%s3085_s1 + $0x270] sm:$0xff] }
 0x2b2   :  { %v551_v54 = vpack.c.bf16 %v550_v53, %v550_v53 }
 0x2b4   :  { %2034 = vmatmul.msk.bf16.vlgmr.msrb.gmra.mxu1 %vm600_vm14, %v551_v54 }
 0x2d0   :  { %v2429_v58 = vpop.permute.xlu1 %2428 }
 0x2d1   :  { %v2431_v59 = vunpack.i.h.bf16 %v2429_v58  ;;  %v2430_v60 = vunpack.i.l.bf16 %v2429_v58 }
 0x2d3   :  { %v990_v62 = vsel %vm299_vm3, %v972_v32, %v2431_v59  ;;  %v985_v63 = vsel %vm299_vm3, %v978_v61, %v2430_v60  ;;  %v2394_v32 = vld [vmem:[%s3085_s1 + $0x298] sm:$0xff] }
 0x2d4   :  { %v991_v0 = vsel %vm55_vm2, %v985_v63, %v990_v62  ;;  %1228 = vmatpush.bf16.msra.mxu3 %v2394_v32 }
 0x2d5   :  { %v993_v1 = vpack.c.bf16 %v991_v0, %v991_v0 }
 0x2d7   :  { %1102 = vmatmul.bf16.vlgmr.msra.gmra.mxu1 %v993_v1 }
 0x2d8   :  { %1229 = vmatpush.bf16.msra.mxu3 %v2393_v34 }
 0x2dc   :  { %1230 = vmatpush.bf16.msra.mxu3 %v2392_v37 }
 0x2e0   :  { %1231 = vmatpush.bf16.msra.mxu3 %v2391_v50 }
 0x2e2   :  { %v1116_v2 = vpop.f32.mrf.mxu2 }
 0x2e4   :  { %1232 = vmatpush.bf16.msra.mxu3 %v2390_v51 }
 0x2e8   :  { %1233 = vmatpush.bf16.msra.mxu3 %v2389_v52  ;;  %v2396_v52 = vld [vmem:[%s3085_s1 + $0x2a8] sm:$0xff] }
 0x2ea   :  { %v1118_v3 = vpop.f32.mrf.mxu2 }
 0x331   :  { %v2867_v4 = vpop.f32.mrf.mxu1 }
 0x332   :  { %v618_v61 = vsel %vm617_vm6, %v2867_v4, 0.0 }
 0x333   :  { %v619_v62 = vrot.slane %v618_v61, 4 }
 0x335   :  { %v620_v63 = vadd.f32 %v619_v62, %v618_v61 }
 0x337   :  { %v621_v0 = vrot.slane %v620_v63, 2 }
 0x339   :  { %v615_v6 = vpop.f32.mrf.mxu1  ;;  %v622_v1 = vadd.f32 %v621_v0, %v620_v63 }
 0x354   :  { %v1103_v5 = vpop.f32.mrf.mxu1 }
 0x355   :  { %v1117_v7 = vadd.f32 %v1116_v2, %v1103_v5  ;;  %v623_v2 = vrot.slane %v622_v1, 1 }
 0x357   :  { %v1120_v8 = vsel %vm496_vm7, %v1117_v7, 0.0  ;;  %v624_v3 = vadd.f32 %v623_v2, %v622_v1  ;;  %v2447_v1 = vld [vmem:[%s3087_s2 + $0xb] ss:$0 sm:$0xff] }
 0x358   :  { %v1121_v9 = vrot.slane %v1120_v8, 4 }
 0x359   :  { %v626_v6 = vmul.f32 0.25, %v624_v3 }
 0x35a   :  { %v1122_v10 = vadd.f32 %v1121_v9, %v1120_v8 }
 0x35b   :  { %v627_v5 = vsub.f32 %v2867_v4, %v626_v6 }
 0x35c   :  { %v1123_v11 = vrot.slane %v1122_v10, 2  ;;  %v1105_v12 = vpop.f32.mrf.mxu1 }
 0x35e   :  { %v1124_v14 = vadd.f32 %v1123_v11, %v1122_v10 }
 0x360   :  { %v1125_v15 = vrot.slane %v1124_v14, 1 }
 0x362   :  { %v1126_v16 = vadd.f32 %v1125_v15, %v1124_v14 }
 0x364   :  { %v1128_v17 = vmul.f32 0.125, %v1126_v16 }
 0x366   :  { %v1129_v18 = vsub.f32 %v1117_v7, %v1128_v17  ;;  %v628_v7 = vmul.f32 %v627_v5, %v627_v5 }
 0x368   :  { %v1130_v19 = vmul.f32 %v1129_v18, %v1129_v18  ;;  %v629_v8 = vsel %vm617_vm6, %v628_v7, 0.0 }
 0x369   :  { %v630_v9 = vrot.slane %v629_v8, 4 }
 0x36a   :  { %v1131_v21 = vsel %vm496_vm7, %v1130_v19, 0.0 }
 0x36b   :  { %v1132_v22 = vrot.slane %v1131_v21, 4  ;;  %v631_v10 = vadd.f32 %v630_v9, %v629_v8 }
 0x36d   :  { %v1133_v23 = vadd.f32 %v1132_v22, %v1131_v21  ;;  %v632_v11 = vrot.slane %v631_v10, 2 }
 0x36f   :  { %v1134_v24 = vrot.slane %v1133_v23, 2  ;;  %v633_v12 = vadd.f32 %v632_v11, %v631_v10 }
 0x371   :  { %v1135_v25 = vadd.f32 %v1134_v24, %v1133_v23  ;;  %v634_v14 = vrot.slane %v633_v12, 1 }
 0x373   :  { %v1136_v26 = vrot.slane %v1135_v25, 1  ;;  %v635_v16 = vadd.f32 %v634_v14, %v633_v12  ;;  %v2451_v12 = vld [vmem:[%s3087_s2 + $0x12] ss:$0 sm:$0xff] }
 0x375   :  { %v1137_v27 = vadd.f32 %v1136_v26, %v1135_v25  ;;  %v637_v21 = vmul.f32 0.25, %v635_v16  ;;  %v2395_v16 = vld [vmem:[%s3085_s1 + $0x2a0] sm:$0xff] }
 0x377   :  { %v1139_v29 = vmul.f32 0.125, %v1137_v27  ;;  %v639_v25 = vadd.f32 1e-05, %v637_v21 }
 0x379   :  { %v1141_v30 = vadd.f32 1e-05, %v1139_v29  ;;  %vm646_vm9 = vweird.f32 %v639_v25 }
 0x37b   :  { %2458 = vrsqrt.f32 %v1141_v30  ;;  %vm1148_vm4 = vweird.f32 %v1141_v30 }
 0x37c   :  { %2460 = vrsqrt.f32 %v639_v25 }
 0x381   :  { %v2459_v31 = vpop.eup %2458 }
 0x382   :  { %v1143_v33 = vmul.f32 %v2459_v31, %v1141_v30  ;;  %vm1149_vm15 = vweird.f32 %v2459_v31 }
 0x383   :  { %vm1150_vm5 = vmor %vm1148_vm4, %vm1149_vm15  ;;  %vm2930_vm15 = vcmp.eq.s32.totalorder %v30_v20, 1  ;;  %vm1301_vm4 = vcmask 130048  }
 0x384   :  { %v1144_v35 = vmul.f32 %v2459_v31, %v1143_v33 }
 0x386   :  { %v1145_v36 = vmul.f32 0.5, %v1144_v35 }
 0x388   :  { %v1146_v40 = vsub.f32 1.5, %v1145_v36 }
 0x38a   :  { %v1147_v39 = vmul.f32 %v2459_v31, %v1146_v40 }
 0x38c   :  { %v1151_v41 = vsel %vm1150_vm5, %v2459_v31, %v1147_v39  ;;  %v2461_v31 = vpop.eup %2460  ;;  %vm1329_vm5 = vcmask 392192  }
 0x38d   :  { %v1152_v42 = vmul.f32 %v1151_v41, %v1140_v38  ;;  %v641_v34 = vmul.f32 %v2461_v31, %v639_v25  ;;  %vm647_vm8 = vweird.f32 %v2461_v31 }
 0x38e   :  { %vm648_vm10 = vmor %vm646_vm9, %vm647_vm8  ;;  %vm1453_vm8 = vcmask 257024  }
 0x38f   :  { %v1154_v43 = vperm.slane %v1152_v42, 0  ;;  %v642_v37 = vmul.f32 %v2461_v31, %v641_v34 }
 0x391   :  { %v1155_v45 = vmul.f32 %v1154_v43, %v1129_v18  ;;  %v643_v39 = vmul.f32 0.5, %v642_v37 }
 0x393   :  { %v1157_v46 = vadd.f32 %v2446_v44, %v1155_v45  ;;  %v644_v43 = vsub.f32 1.5, %v643_v39 }
 0x395   :  { %v1158_v47 = vmul.f32 0.01, %v1157_v46  ;;  %v645_v45 = vmul.f32 %v2461_v31, %v644_v43 }
 0x397   :  { %v1159_v48 = vmax.f32 %v1157_v46, %v1158_v47  ;;  %v638_v46 = vld [vmem:[%s3087_s2 + $0x4] sm:$0x1]  ;;  %v649_v47 = vsel %vm648_vm10, %v2461_v31, %v645_v45  ;;  %v2400_v45 = vld [vmem:[%s3085_s1 + $0x2c8] sm:$0xff] }
 0x398   :  { %v650_v51 = vmul.f32 %v649_v47, %v638_v46  ;;  %1446 = vmatpush.bf16.msrb.mxu3 %v2400_v45  ;;  %v2399_v46 = vld [vmem:[%s3085_s1 + $0x2c0] sm:$0xff]  ;;  %v2402_v45 = vld [vmem:[%s3085_s1 + $0x2d8] sm:$0xff] }
 0x399   :  { %1165 = vrot.lane.b32.xlu2 %v1159_v48, %s2471_s30  ;;  %v1168_v49 = vrot.slane %v1159_v48, 4  ;;  %v1161_v54 = vrot.slane %v1159_v48, 3 }
 0x39b   :  { %v1163_v55 = vsel %vm22_vm0, 0.0, %v1161_v54 }
 0x39c   :  { %v1164_v56 = vsel %vm2565_vm1, 0.0, %v1163_v55  ;;  %v652_v55 = vperm.slane %v650_v51, 0  ;;  %1447 = vmatpush.bf16.msrb.mxu3 %v2399_v46 }
 0x3a1   :  { %1169 = vrot.lane.b32.xlu2 %v1168_v49, %s2470_s6  ;;  %v2397_v49 = vld [vmem:[%s3085_s1 + $0x2b0] sm:$0xff] }
 0x3a2   :  { %1338 = vmatpush.bf16.msrb.mxu0 %v2397_v49 }
 0x3a6   :  { %1339 = vmatpush.bf16.msrb.mxu0 %v2396_v52  ;;  %v1366_v52 = vld [vmem:[%s3087_s2 + $0xc] sm:$0x1] }
 0x3aa   :  { %1340 = vmatpush.bf16.msrb.mxu0 %v2395_v16 }
 0x3f3   :  { %v1166_v53 = vpop.permute.xlu2 %1165 }
 0x3f4   :  { %v1172_v57 = vsel %vm496_vm7, %v1164_v56, %v1166_v53 }
 0x3fb   :  { %v1170_v58 = vpop.permute.xlu2 %1169 }
 0x3fc   :  { %v1173_v59 = vsel %vm299_vm3, %v1172_v57, %v1170_v58  ;;  %v1259_v57 = vld [vmem:[%s3087_s2 + $0xa] sm:$0x1] }
 0x3fd   :  { %v1174_v60 = vpack.c.bf16 %v1173_v59, %v1173_v59  ;;  %v653_v59 = vmul.f32 %v652_v55, %v627_v5 }
 0x3ff   :  { %2208 = vmatmul.msk.bf16.vlgmr.msra.gmra.mxu3 %vm600_vm14, %v1174_v60  ;;  %v2445_v60 = vld [vmem:[%s3087_s2 + $0x5] ss:$0 sm:$0xff]  ;;  %vm1288_vm14 = vcmask 1042432  }
 0x400   :  { %v655_v63 = vadd.f32 %v2445_v60, %v653_v59  ;;  %1546 = vmatpush.bf16.msra.mxu3 %v2402_v45 }
 0x402   :  { %v656_v3 = vmul.f32 0.01, %v655_v63 }
 0x404   :  { %v657_v8 = vmax.f32 %v655_v63, %v656_v3 }
 0x482   :  { %v1235_v15 = vpop.f32.mrf.mxu3 }
 0x483   :  { %v1239_v17 = vsel %vm617_vm6, %v1235_v15, 0.0 }
 0x484   :  { %v1240_v18 = vrot.slane %v1239_v17, 4 }
 0x486   :  { %v1241_v19 = vadd.f32 %v1240_v18, %v1239_v17 }
 0x488   :  { %v1242_v22 = vrot.slane %v1241_v19, 2 }
 0x48a   :  { %v1243_v23 = vadd.f32 %v1242_v22, %v1241_v19  ;;  %v1237_v24 = vpop.f32.mrf.mxu3 }
 0x48c   :  { %v1244_v4 = vrot.slane %v1243_v23, 1 }
 0x48e   :  { %v1245_v26 = vadd.f32 %v1244_v4, %v1243_v23 }
 0x490   :  { %v1247_v27 = vmul.f32 0.25, %v1245_v26 }
 0x492   :  { %v1248_v29 = vsub.f32 %v1235_v15, %v1247_v27 }
 0x494   :  { %v1249_v30 = vmul.f32 %v1248_v29, %v1248_v29 }
 0x496   :  { %v1250_v32 = vsel %vm617_vm6, %v1249_v30, 0.0 }
 0x497   :  { %v1251_v33 = vrot.slane %v1250_v32, 4 }
 0x499   :  { %v1252_v35 = vadd.f32 %v1251_v33, %v1250_v32 }
 0x49b   :  { %v1253_v36 = vrot.slane %v1252_v35, 2 }
 0x49d   :  { %v1254_v40 = vadd.f32 %v1253_v36, %v1252_v35 }
 0x49f   :  { %v1255_v38 = vrot.slane %v1254_v40, 1 }
 0x4a1   :  { %v1256_v41 = vadd.f32 %v1255_v38, %v1254_v40 }
 0x4a3   :  { %v1258_v42 = vmul.f32 0.25, %v1256_v41  ;;  %v2398_v41 = vld [vmem:[%s3085_s1 + $0x2b8] sm:$0xff] }
 0x4a4   :  { %1405 = vmatpush.bf16.msrb.mxu2 %v2398_v41 }
 0x4a5   :  { %v1260_v44 = vadd.f32 1e-05, %v1258_v42 }
 0x4a7   :  { %2462 = vrsqrt.f32 %v1260_v44  ;;  %vm1267_vm12 = vweird.f32 %v1260_v44 }
 0x4ad   :  { %v2463_v48 = vpop.eup %2462 }
 0x4ae   :  { %v1262_v50 = vmul.f32 %v2463_v48, %v1260_v44  ;;  %vm1268_vm11 = vweird.f32 %v2463_v48 }
 0x4af   :  { %vm1269_vm13 = vmor %vm1267_vm12, %vm1268_vm11 }
 0x4b0   :  { %v1263_v53 = vmul.f32 %v2463_v48, %v1262_v50 }
 0x4b2   :  { %v1264_v54 = vmul.f32 0.5, %v1263_v53 }
 0x4b4   :  { %v1265_v56 = vsub.f32 1.5, %v1264_v54 }
 0x4b6   :  { %v1266_v58 = vmul.f32 %v2463_v48, %v1265_v56 }
 0x4b8   :  { %v1270_v61 = vsel %vm1269_vm13, %v2463_v48, %v1266_v58 }
 0x4b9   :  { %v1271_v62 = vmul.f32 %v1270_v61, %v1259_v57  ;;  %v2448_v57 = vld [vmem:[%s3087_s2 + $0xd] ss:$0 sm:$0xff] }
 0x4bb   :  { %v1273_v0 = vperm.slane %v1271_v62, 0 }
 0x4bd   :  { %v1274_v2 = vmul.f32 %v1273_v0, %v1248_v29 }
 0x4bf   :  { %v1276_v6 = vadd.f32 %v2447_v1, %v1274_v2 }
 0x4c1   :  { %v1277_v7 = vmul.f32 0.01, %v1276_v6 }
 0x4c3   :  { %v1278_v9 = vmax.f32 %v1276_v6, %v1277_v7 }
 0x4c5   :  { %v1279_v5 = vadd.f32 %v1278_v9, %v657_v8 }
 0x4c7   :  { %v1280_v10 = vmul.f32 0.5, %v1279_v5 }
 0x4c9   :  { %1294 = vrot.lane.b32.xlu0 %v1280_v10, %s2472_s13  ;;  %v1286_v11 = vrot.slane %v1280_v10, 1  ;;  %v1282_v17 = vrot.slane %v1280_v10, 7 }
 0x4cb   :  { %v1289_v14 = vsel %vm1288_vm14, %v1286_v11, 0.0  ;;  %v1284_v18 = vsel %vm22_vm0, 0.0, %v1282_v17 }
 0x4cc   :  { %v1293_v15 = vsel %vm2930_vm15, 0.0, %v1289_v14  ;;  %v1285_v20 = vsel %vm2565_vm1, 0.0, %v1284_v18 }
 0x4cd   :  { %1298 = vrot.lane.b32.xlu1 %v1293_v15, %s2471_s30 }
 0x53b   :  { %v1295_v13 = vpop.permute.xlu0 %1294 }
 0x53c   :  { %v1302_v19 = vsel %vm1301_vm4, %v1285_v20, %v1295_v13 }
 0x53f   :  { %v1299_v21 = vpop.permute.xlu1 %1298 }
 0x540   :  { %v1303_v22 = vsel %vm496_vm7, %v1302_v19, %v1299_v21 }
 0x541   :  { %v1304_v23 = vpack.c.bf16 %v1303_v22, %v1303_v22 }
 0x543   :  { %2221 = vmatmul.msk.bf16.vlgmr.msrb.gmra.mxu0 %vm1329_vm5, %v1304_v23 }
 0x5c0   :  { %v1342_v24 = vpop.f32.mrf.mxu0 }
 0x5c1   :  { %v1346_v25 = vsel %vm617_vm6, %v1342_v24, 0.0 }
 0x5c2   :  { %v1347_v4 = vrot.slane %v1346_v25, 4 }
 0x5c4   :  { %v1348_v26 = vadd.f32 %v1347_v4, %v1346_v25 }
 0x5c6   :  { %v1349_v27 = vrot.slane %v1348_v26, 2 }
 0x5c8   :  { %v1350_v29 = vadd.f32 %v1349_v27, %v1348_v26  ;;  %v1344_v30 = vpop.f32.mrf.mxu0 }
 0x5ca   :  { %v1351_v31 = vrot.slane %v1350_v29, 1 }
 0x5cc   :  { %v1352_v32 = vadd.f32 %v1351_v31, %v1350_v29 }
 0x5ce   :  { %v1354_v28 = vmul.f32 0.25, %v1352_v32 }
 0x5d0   :  { %v1355_v33 = vsub.f32 %v1342_v24, %v1354_v28 }
 0x5d2   :  { %v1356_v34 = vmul.f32 %v1355_v33, %v1355_v33 }
 0x5d4   :  { %v1357_v35 = vsel %vm617_vm6, %v1356_v34, 0.0 }
 0x5d5   :  { %v1358_v36 = vrot.slane %v1357_v35, 4 }
 0x5d7   :  { %v1359_v37 = vadd.f32 %v1358_v36, %v1357_v35 }
 0x5d9   :  { %v1360_v40 = vrot.slane %v1359_v37, 2 }
 0x5db   :  { %v1361_v38 = vadd.f32 %v1360_v40, %v1359_v37 }
 0x5dd   :  { %v1362_v39 = vrot.slane %v1361_v38, 1 }
 0x5df   :  { %v1363_v42 = vadd.f32 %v1362_v39, %v1361_v38 }
 0x5e1   :  { %v1365_v43 = vmul.f32 0.25, %v1363_v42 }
 0x5e3   :  { %v1367_v44 = vadd.f32 1e-05, %v1365_v43 }
 0x5e5   :  { %2464 = vrsqrt.f32 %v1367_v44  ;;  %vm1374_vm1 = vweird.f32 %v1367_v44 }
 0x5eb   :  { %v2465_v47 = vpop.eup %2464 }
 0x5ec   :  { %v1369_v48 = vmul.f32 %v2465_v47, %v1367_v44  ;;  %vm1375_vm0 = vweird.f32 %v2465_v47 }
 0x5ed   :  { %vm1376_vm6 = vmor %vm1374_vm1, %vm1375_vm0 }
 0x5ee   :  { %v1370_v49 = vmul.f32 %v2465_v47, %v1369_v48  ;;  %v2401_v48 = vld [vmem:[%s3085_s1 + $0x2d0] sm:$0xff] }
 0x5ef   :  { %1547 = vmatpush.bf16.msra.mxu3 %v2401_v48 }
 0x5f0   :  { %v1371_v50 = vmul.f32 0.5, %v1370_v49  ;;  %v2406_v49 = vld [vmem:[%s3085_s1 + $0x2f8] sm:$0xff] }
 0x5f1   :  { %1610 = vmatpush.bf16.msra.mxu0 %v2406_v49 }
 0x5f2   :  { %v1372_v51 = vsub.f32 1.5, %v1371_v50  ;;  %v2405_v50 = vld [vmem:[%s3085_s1 + $0x2f0] sm:$0xff] }
 0x5f4   :  { %v1373_v53 = vmul.f32 %v2465_v47, %v1372_v51 }
 0x5f5   :  { %1611 = vmatpush.bf16.msra.mxu0 %v2405_v50 }
 0x5f6   :  { %v1377_v54 = vsel %vm1376_vm6, %v2465_v47, %v1373_v53 }
 0x5f7   :  { %v1378_v55 = vmul.f32 %v1377_v54, %v1366_v52 }
 0x5f9   :  { %v1380_v56 = vperm.slane %v1378_v55, 0 }
 0x5fb   :  { %v1381_v58 = vmul.f32 %v1380_v56, %v1355_v33  ;;  %v1492_v56 = vld [vmem:[%s3087_s2 + $0xe] sm:$0x1] }
 0x5fd   :  { %v1383_v59 = vadd.f32 %v2448_v57, %v1381_v58 }
 0x5ff   :  { %v1384_v60 = vmul.f32 0.01, %v1383_v59 }
 0x601   :  { %v1385_v61 = vmax.f32 %v1383_v59, %v1384_v60 }
 0x603   :  { %1416 = vrot.lane.b32.xlu2 %v1385_v61, %s2472_s13  ;;  %v1386_v62 = vpack.c.bf16 %v1385_v61, %v1385_v61  ;;  %v1412_v63 = vrot.slane %v1385_v61, 1  ;;  %v2449_v61 = vld [vmem:[%s3087_s2 + $0xf] ss:$0 sm:$0xff] }
 0x605   :  { %2226 = vmatmul.msk.bf16.vlgmr.msrb.gmra.mxu2 %vm1301_vm4, %v1386_v62  ;;  %v1414_v0 = vsel %vm1288_vm14, %v1412_v63, 0.0 }
 0x606   :  { %v1415_v2 = vsel %vm2930_vm15, 0.0, %v1414_v0 }
 0x65d   :  { %v1417_v1 = vpop.permute.xlu2 %1416 }
 0x65e   :  { %v1419_v3 = vsel %vm1301_vm4, %v1415_v2, %v1417_v1 }
 0x65f   :  { %v1420_v6 = vpack.c.bf16 %v1419_v3, %v1419_v3 }
 0x661   :  { %2235 = vmatmul.msk.bf16.vlgmr.msrb.gmra.mxu3 %vm496_vm7, %v1420_v6 }
 0x688   :  { %v1407_v7 = vpop.f32.mrf.mxu2 }
 0x689   :  { %v1454_v9 = vsel %vm1453_vm8, %v1407_v7, 0.0 }
 0x68a   :  { %v1455_v5 = vrot.slane %v1454_v9, 4 }
 0x68c   :  { %v1456_v10 = vadd.f32 %v1455_v5, %v1454_v9 }
 0x68e   :  { %v1457_v11 = vrot.slane %v1456_v10, 2 }
 0x690   :  { %v1409_v8 = vpop.f32.mrf.mxu2  ;;  %v1458_v17 = vadd.f32 %v1457_v11, %v1456_v10  ;;  %v2404_v11 = vld [vmem:[%s3085_s1 + $0x2e8] sm:$0xff] }
 0x691   :  { %1612 = vmatpush.bf16.msra.mxu0 %v2404_v11  ;;  %v2416_v11 = vld [vmem:[%s3085_s1 + $0x348] sm:$0xff] }
 0x692   :  { %v1459_v20 = vrot.slane %v1458_v17, 1 }
 0x694   :  { %v1460_v23 = vadd.f32 %v1459_v20, %v1458_v17 }
 0x6e4   :  { %v1449_v14 = vpop.f32.mrf.mxu3 }
 0x6e5   :  { %v1462_v15 = vsel %vm1453_vm8, %v1449_v14, 0.0 }
 0x6e6   :  { %v1463_v16 = vrot.slane %v1462_v15, 4 }
 0x6e8   :  { %v1464_v18 = vadd.f32 %v1463_v16, %v1462_v15 }
 0x6ea   :  { %v1465_v13 = vrot.slane %v1464_v18, 2 }
 0x6ec   :  { %v1466_v19 = vadd.f32 %v1465_v13, %v1464_v18  ;;  %v1451_v21 = vpop.f32.mrf.mxu3 }
 0x6ee   :  { %v1467_v22 = vrot.slane %v1466_v19, 1 }
 0x6f0   :  { %v1468_v24 = vadd.f32 %v1467_v22, %v1466_v19 }
 0x6f2   :  { %v1469_v25 = vadd.f32 %v1468_v24, %v1460_v23 }
 0x6f4   :  { %v1470_v4 = vmul.f32 0.125, %v1469_v25 }
 0x6f6   :  { %v1471_v26 = vsub.f32 %v1407_v7, %v1470_v4  ;;  %v1472_v27 = vsub.f32 %v1449_v14, %v1470_v4  ;;  %v2403_v14 = vld [vmem:[%s3085_s1 + $0x2e0] sm:$0xff] }
 0x6f7   :  { %1613 = vmatpush.bf16.msra.mxu0 %v2403_v14 }
 0x6f8   :  { %v1473_v29 = vmul.f32 %v1471_v26, %v1471_v26  ;;  %v1482_v30 = vmul.f32 %v1472_v27, %v1472_v27 }
 0x6fa   :  { %v1474_v31 = vsel %vm1453_vm8, %v1473_v29, 0.0  ;;  %v1483_v32 = vsel %vm1453_vm8, %v1482_v30, 0.0 }
 0x6fb   :  { %v1475_v28 = vrot.slane %v1474_v31, 4  ;;  %v1484_v33 = vrot.slane %v1483_v32, 4 }
 0x6fd   :  { %v1476_v34 = vadd.f32 %v1475_v28, %v1474_v31  ;;  %v1485_v35 = vadd.f32 %v1484_v33, %v1483_v32 }
 0x6ff   :  { %v1477_v36 = vrot.slane %v1476_v34, 2  ;;  %v1486_v37 = vrot.slane %v1485_v35, 2 }
 0x701   :  { %v1478_v40 = vadd.f32 %v1477_v36, %v1476_v34  ;;  %v1487_v38 = vadd.f32 %v1486_v37, %v1485_v35 }
 0x703   :  { %v1479_v39 = vrot.slane %v1478_v40, 1  ;;  %v1488_v41 = vrot.slane %v1487_v38, 1 }
 0x705   :  { %v1480_v42 = vadd.f32 %v1479_v39, %v1478_v40  ;;  %v1489_v43 = vadd.f32 %v1488_v41, %v1487_v38 }
 0x707   :  { %v1490_v44 = vadd.f32 %v1489_v43, %v1480_v42 }
 0x709   :  { %v1491_v46 = vmul.f32 0.125, %v1490_v44 }
 0x70b   :  { %v1493_v47 = vadd.f32 1e-05, %v1491_v46 }
 0x70d   :  { %2466 = vrsqrt.f32 %v1493_v47  ;;  %vm1500_vm10 = vweird.f32 %v1493_v47 }
 0x713   :  { %v2467_v51 = vpop.eup %2466 }
 0x714   :  { %v1495_v52 = vmul.f32 %v2467_v51, %v1493_v47  ;;  %vm1501_vm9 = vweird.f32 %v2467_v51 }
 0x715   :  { %vm1502_vm11 = vmor %vm1500_vm10, %vm1501_vm9 }
 0x716   :  { %v1496_v53 = vmul.f32 %v2467_v51, %v1495_v52 }
 0x718   :  { %v1497_v54 = vmul.f32 0.5, %v1496_v53 }
 0x71a   :  { %v1498_v55 = vsub.f32 1.5, %v1497_v54 }
 0x71c   :  { %v1499_v57 = vmul.f32 %v2467_v51, %v1498_v55 }
 0x71e   :  { %v1503_v58 = vsel %vm1502_vm11, %v2467_v51, %v1499_v57 }
 0x71f   :  { %v1504_v59 = vmul.f32 %v1503_v58, %v1492_v56  ;;  %v2410_v56 = vld [vmem:[%s3085_s1 + $0x318] sm:$0xff] }
 0x720   :  { %1769 = vmatpush.bf16.msra.mxu2 %v2410_v56 }
 0x721   :  { %v1506_v60 = vperm.slane %v1504_v59, 0 }
 0x723   :  { %v1507_v62 = vmul.f32 %v1506_v60, %v1471_v26  ;;  %v1512_v63 = vmul.f32 %v1506_v60, %v1472_v27 }
 0x725   :  { %v1509_v0 = vadd.f32 %v2449_v61, %v1507_v62  ;;  %v1513_v1 = vadd.f32 %v2449_v61, %v1512_v63  ;;  %v2409_v61 = vld [vmem:[%s3085_s1 + $0x310] sm:$0xff] }
 0x726   :  { %1770 = vmatpush.bf16.msra.mxu2 %v2409_v61 }
 0x727   :  { %v1514_v2 = vmul.f32 0.01, %v1513_v1  ;;  %v1510_v3 = vmul.f32 0.01, %v1509_v0 }
 0x729   :  { %v1515_v6 = vmax.f32 %v1513_v1, %v1514_v2  ;;  %v1511_v7 = vmax.f32 %v1509_v0, %v1510_v3  ;;  %v2408_v1 = vld [vmem:[%s3085_s1 + $0x308] sm:$0xff] }
 0x72a   :  { %1771 = vmatpush.bf16.msra.mxu2 %v2408_v1 }
 0x72b   :  { %v1517_v8 = vrot.slane %v1515_v6, 4  ;;  %v2432_v9 = vpack.i.bf16 %v1511_v7, %v1515_v6  ;;  %v1558_v15 = vrot.slane %v1511_v7, 1 }
 0x72d   :  { %2433 = vrot.lane.b32.xlu0 %v2432_v9, %s2471_s30  ;;  %v1519_v5 = vsel %vm55_vm2, %v1511_v7, %v1517_v8  ;;  %v1560_v16 = vsel %vm1288_vm14, %v1558_v15, 0.0  ;;  %v2418_v7 = vld [vmem:[%s3085_s1 + $0x358] sm:$0xff]  ;;  %v2417_v8 = vld [vmem:[%s3085_s1 + $0x350] sm:$0xff] }
 0x72e   :  { %v1520_v10 = vpack.c.bf16 %v1519_v5, %v1519_v5  ;;  %v1561_v20 = vsel %vm2930_vm15, 0.0, %v1560_v16  ;;  %1827 = vmatpush.bf16.msrb.mxu1 %v2418_v7  ;;  %v2415_v16 = vld [vmem:[%s3085_s1 + $0x340] sm:$0xff] }
 0x730   :  { %2244 = vmatmul.msk.bf16.vlgmr.msra.gmra.mxu3 %vm496_vm7, %v1520_v10 }
 0x732   :  { %1828 = vmatpush.bf16.msrb.mxu1 %v2417_v8 }
 0x736   :  { %1829 = vmatpush.bf16.msrb.mxu1 %v2416_v11 }
 0x73a   :  { %1830 = vmatpush.bf16.msrb.mxu1 %v2415_v16 }
 0x79f   :  { %v2434_v17 = vpop.permute.xlu0 %2433 }
 0x7a0   :  { %v2436_v18 = vunpack.i.h.bf16 %v2434_v17  ;;  %v2435_v13 = vunpack.i.l.bf16 %v2434_v17  ;;  %v1657_v17 = vld [vmem:[%s3087_s2 + $0x10] sm:$0x1] }
 0x7a2   :  { %v1565_v19 = vsel %vm496_vm7, %v1561_v20, %v2435_v13  ;;  %v1557_v22 = vsel %vm496_vm7, %v1515_v6, %v2436_v18  ;;  %v2407_v6 = vld [vmem:[%s3085_s1 + $0x300] sm:$0xff]  ;;  %v2414_v20 = vld [vmem:[%s3085_s1 + $0x338] sm:$0xff] }
 0x7a3   :  { %v1567_v21 = vrot.slane %v1565_v19, 4  ;;  %1772 = vmatpush.bf16.msra.mxu2 %v2407_v6  ;;  %1831 = vmatpush.bf16.msrb.mxu1 %v2414_v20 }
 0x7a5   :  { %v1569_v23 = vsel %vm55_vm2, %v1557_v22, %v1567_v21  ;;  %v2450_v22 = vld [vmem:[%s3087_s2 + $0x11] ss:$0 sm:$0xff] }
 0x7a6   :  { %v1570_v24 = vpack.c.bf16 %v1569_v23, %v1569_v23  ;;  %v2413_v23 = vld [vmem:[%s3085_s1 + $0x330] sm:$0xff] }
 0x7a7   :  { %1832 = vmatpush.bf16.msrb.mxu1 %v2413_v23 }
 0x7a8   :  { %2261 = vmatmul.msk.bf16.vlgmr.msra.gmra.mxu0 %vm299_vm3, %v1570_v24 }
 0x7b3   :  { %v1549_v25 = vpop.f32.mrf.mxu3 }
 0x7b4   :  { %v1619_v26 = vsel %vm299_vm3, %v1549_v25, 0.0 }
 0x7b5   :  { %v1620_v27 = vrot.slane %v1619_v26, 4 }
 0x7b7   :  { %v1621_v29 = vadd.f32 %v1620_v27, %v1619_v26 }
 0x7b9   :  { %v1622_v30 = vrot.slane %v1621_v29, 2 }
 0x7bb   :  { %v1551_v4 = vpop.f32.mrf.mxu3  ;;  %v1623_v33 = vadd.f32 %v1622_v30, %v1621_v29 }
 0x7bd   :  { %v1624_v36 = vrot.slane %v1623_v33, 1 }
 0x7bf   :  { %v1625_v39 = vadd.f32 %v1624_v36, %v1623_v33 }
 0x825   :  { %v1615_v31 = vpop.f32.mrf.mxu0 }
 0x826   :  { %v1627_v32 = vsel %vm299_vm3, %v1615_v31, 0.0 }
 0x827   :  { %v1628_v28 = vrot.slane %v1627_v32, 4 }
 0x829   :  { %v1629_v34 = vadd.f32 %v1628_v28, %v1627_v32 }
 0x82b   :  { %v1630_v35 = vrot.slane %v1629_v34, 2 }
 0x82d   :  { %v1631_v37 = vadd.f32 %v1630_v35, %v1629_v34  ;;  %v1617_v40 = vpop.f32.mrf.mxu0 }
 0x82e   :  { %v2411_v40 = vld [vmem:[%s3085_s1 + $0x320] sm:$0xff] }
 0x82f   :  { %v1632_v38 = vrot.slane %v1631_v37, 1 }
 0x831   :  { %v1633_v41 = vadd.f32 %v1632_v38, %v1631_v37  ;;  %v2412_v37 = vld [vmem:[%s3085_s1 + $0x328] sm:$0xff] }
 0x832   :  { %1833 = vmatpush.bf16.msrb.mxu1 %v2412_v37 }
 0x833   :  { %v1634_v42 = vadd.f32 %v1633_v41, %v1625_v39 }
 0x835   :  { %v1635_v43 = vmul.f32 0.0625, %v1634_v42 }
 0x836   :  { %1834 = vmatpush.bf16.msrb.mxu1 %v2411_v40 }
 0x837   :  { %v1636_v44 = vsub.f32 %v1549_v25, %v1635_v43  ;;  %v1637_v45 = vsub.f32 %v1615_v31, %v1635_v43 }
 0x839   :  { %v1638_v46 = vmul.f32 %v1636_v44, %v1636_v44  ;;  %v1647_v47 = vmul.f32 %v1637_v45, %v1637_v45 }
 0x83b   :  { %v1639_v48 = vsel %vm299_vm3, %v1638_v46, 0.0  ;;  %v1648_v49 = vsel %vm299_vm3, %v1647_v47, 0.0 }
 0x83c   :  { %v1640_v50 = vrot.slane %v1639_v48, 4  ;;  %v1649_v51 = vrot.slane %v1648_v49, 4 }
 0x83e   :  { %v1641_v52 = vadd.f32 %v1640_v50, %v1639_v48  ;;  %v1650_v53 = vadd.f32 %v1649_v51, %v1648_v49 }
 0x840   :  { %v1642_v54 = vrot.slane %v1641_v52, 2  ;;  %v1651_v55 = vrot.slane %v1650_v53, 2 }
 0x842   :  { %v1643_v57 = vadd.f32 %v1642_v54, %v1641_v52  ;;  %v1652_v58 = vadd.f32 %v1651_v55, %v1650_v53 }
 0x844   :  { %v1644_v59 = vrot.slane %v1643_v57, 1  ;;  %v1653_v60 = vrot.slane %v1652_v58, 1 }
 0x846   :  { %v1645_v62 = vadd.f32 %v1644_v59, %v1643_v57  ;;  %v1654_v63 = vadd.f32 %v1653_v60, %v1652_v58 }
 0x848   :  { %v1655_v0 = vadd.f32 %v1654_v63, %v1645_v62 }
 0x84a   :  { %v1656_v2 = vmul.f32 0.0625, %v1655_v0 }
 0x84c   :  { %v1658_v3 = vadd.f32 1e-05, %v1656_v2 }
 0x84e   :  { %2468 = vrsqrt.f32 %v1658_v3  ;;  %vm1665_vm12 = vweird.f32 %v1658_v3 }
 0x854   :  { %v2469_v9 = vpop.eup %2468 }
 0x855   :  { %v1660_v5 = vmul.f32 %v2469_v9, %v1658_v3  ;;  %vm1666_vm7 = vweird.f32 %v2469_v9 }
 0x856   :  { %vm1667_vm13 = vmor %vm1665_vm12, %vm1666_vm7 }
 0x857   :  { %v1661_v10 = vmul.f32 %v2469_v9, %v1660_v5 }
 0x859   :  { %v1662_v14 = vmul.f32 0.5, %v1661_v10 }
 0x85b   :  { %v1663_v15 = vsub.f32 1.5, %v1662_v14 }
 0x85d   :  { %v1664_v18 = vmul.f32 %v2469_v9, %v1663_v15 }
 0x85f   :  { %v1668_v13 = vsel %vm1667_vm13, %v2469_v9, %v1664_v18 }
 0x860   :  { %v1669_v19 = vmul.f32 %v1668_v13, %v1657_v17 }
 0x862   :  { %v1671_v21 = vperm.slane %v1669_v19, 0 }
 0x864   :  { %v1672_v24 = vmul.f32 %v1671_v21, %v1636_v44  ;;  %v1677_v25 = vmul.f32 %v1671_v21, %v1637_v45 }
 0x866   :  { %v1674_v4 = vadd.f32 %v2450_v22, %v1672_v24  ;;  %v1678_v26 = vadd.f32 %v2450_v22, %v1677_v25 }
 0x868   :  { %v1675_v27 = vmul.f32 0.01, %v1674_v4  ;;  %v1679_v29 = vmul.f32 0.01, %v1678_v26 }
 0x86a   :  { %v1676_v30 = vmax.f32 %v1674_v4, %v1675_v27  ;;  %v1680_v31 = vmax.f32 %v1678_v26, %v1679_v29 }
 0x86c   :  { %v1685_v32 = vrot.slane %v1676_v30, 4  ;;  %v1682_v28 = vrot.slane %v1680_v31, 4  ;;  %v1706_v38 = vrot.slane %v1676_v30, 1 }
 0x86e   :  { %v1688_v33 = vsel %vm55_vm2, %v1685_v32, %v1680_v31  ;;  %v2437_v34 = vpack.i.bf16 %v1682_v28, %v1676_v30  ;;  %v1687_v35 = vsel %vm55_vm2, %v1676_v30, %v1682_v28  ;;  %v1708_v39 = vsel %vm1288_vm14, %v1706_v38, 0.0 }
 0x86f   :  { %v1689_v36 = vpack.c.bf16 %v1688_v33, %v1687_v35  ;;  %v1709_v44 = vsel %vm2930_vm15, 0.0, %v1708_v39 }
 0x870   :  { %2438 = vrot.lane.b32.xlu1 %v2437_v34, %s2470_s6 }
 0x871   :  { %2278 = vmatmul.msk.bf16.vlgmr.msra.gmra.mxu2 %vm299_vm3, %v1689_v36 }
 0x8e2   :  { %v2439_v41 = vpop.permute.xlu1 %2438 }
 0x8e3   :  { %v2441_v42 = vunpack.i.h.bf16 %v2439_v41  ;;  %v2440_v43 = vunpack.i.l.bf16 %v2439_v41 }
 0x8e5   :  { %v1705_v45 = vsel %vm299_vm3, %v1676_v30, %v2441_v42  ;;  %v1701_v46 = vsel %vm299_vm3, %v1680_v31, %v2440_v43  ;;  %v1710_v47 = vsel %vm299_vm3, %v1709_v44, %v2441_v42 }
 0x8e6   :  { %v1712_v48 = vrot.slane %v1701_v46, 4  ;;  %v1715_v49 = vrot.slane %v1710_v47, 4  ;;  %v1717_v50 = vsel %vm55_vm2, %v1701_v46, %v1705_v45 }
 0x8e8   :  { %v1718_v51 = vsel %vm55_vm2, %v1712_v48, %v1715_v49 }
 0x8e9   :  { %v1719_v52 = vpack.c.bf16 %v1718_v51, %v1717_v50 }
 0x8eb   :  { %1835 = vmatmul.bf16.vlgmr.msrb.gmra.mxu1 %v1719_v52 }
 0x8f4   :  { %v1774_v53 = vpop.f32.mrf.mxu2 }
 0x8f5   :  { %v1775_v54 = vadd.f32 %v2451_v12, %v1774_v53 }
 0x8f7   :  { %v1845_v56 = vrot.slane %v1775_v54, 4 }
 0x8fc   :  { %v1776_v58 = vpop.f32.mrf.mxu2 }
 0x8fd   :  { %v1777_v61 = vadd.f32 %v2451_v12, %v1776_v58 }
 0x8ff   :  { %v1851_v0 = vrot.slane %v1777_v61, 4 }
 0x968   :  { %v1836_v55 = vpop.f32.mrf.mxu1 }
 0x969   :  { %v1837_v57 = vadd.f32 %v2451_v12, %v1836_v55 }
 0x96b   :  { %v1842_v59 = vrot.slane %v1837_v57, 4  ;;  %v1854_v60 = vsel %vm55_vm2, %v1845_v56, %v1837_v57 }
 0x96c   :  { %1858 = vst [vmem:[%s3088_s3 + $0x8] sm:$0xff] %v1854_v60 }
 0x96d   :  { %v1853_v62 = vsel %vm55_vm2, %v1775_v54, %v1842_v59 }
 0x96e   :  { %1857 = vst [vmem:[%s3088_s3] sm:$0xff] %v1853_v62 }
 0x970   :  { %v1838_v63 = vpop.f32.mrf.mxu1 }
 0x971   :  { %v1839_v1 = vadd.f32 %v2451_v12, %v1838_v63 }
 0x973   :  { %v1848_v2 = vrot.slane %v1839_v1, 4  ;;  %v1856_v3 = vsel %vm55_vm2, %v1851_v0, %v1839_v1 }
 0x974   :  { %1860 = vst [vmem:[%s3088_s3 + $0x18] sm:$0xff] %v1856_v3 }
 0x975   :  { %v1855_v6 = vsel %vm55_vm2, %v1777_v61, %v1848_v2 }
 0x976   :  { %1859 = vst [vmem:[%s3088_s3 + $0x10] sm:$0xff] %v1855_v6 }

</bundles_post_ra>
